<compile_context>
chip_gen: v6e
topology: v6e:2x2x1
jax: 0.10.0
libtpu: 0.0.40
codegen_flags: <defaults>
</compile_context>

<pallas_src>
import functools

import jax
import jax.numpy as jnp
from jax import lax
from jax.experimental import pallas as pl
from jax.experimental.pallas import tpu as pltpu


ENC_EMB_SCALE = 1.0


def _round_up(x, m):
    return (x + m - 1) // m * m


# ----------------------------------------------------------------------------
# Integer-id path: batched row gather with manual, double-buffered DMAs.
#   Each grid step gathers G embedding rows (amortizing the ~0.35 us per-step
#   overhead ~Gx), overlaps the G tiny row-DMAs with each other, prefetches
#   the *next* step's rows into the other buffer slot, and writes a full
#   (G, D) slab (lane/sublane-aligned stores, no vst.msk).
# ----------------------------------------------------------------------------
def _gather_kernel(ids_ref, w_hbm, out_ref, row_buf, sems, *, G, scale):
    # ids_ref : SMEM (M_pad,) int32   (scalar-prefetched token ids)
    # w_hbm   : HBM  (V, D)           (memory_space=pl.ANY, DMA'd manually)
    # out_ref : VMEM (G, D)
    # row_buf : VMEM (2, G, D) scratch (double buffer)
    # sems    : DMA semaphores (2, G)
    t = pl.program_id(0)
    nsteps = pl.num_programs(0)

    def issue(step, slot):
        for g in range(G):
            rid = ids_ref[step * G + g]
            pltpu.make_async_copy(
                w_hbm.at[pl.ds(rid, 1)],
                row_buf.at[slot, pl.ds(g, 1)],
                sems.at[slot, g],
            ).start()

    # Prime the pipeline on the very first step.
    @pl.when(t == 0)
    def _():
        issue(0, 0)

    # Prefetch the next step's rows into the other slot (its previous contents
    # were fully consumed on the previous grid step).
    @pl.when(t + 1 < nsteps)
    def _():
        issue(t + 1, (t + 1) & 1)

    # Wait for this step's rows, then store the whole (G, D) slab.
    slot = t & 1
    for g in range(G):
        pltpu.make_async_copy(
            w_hbm.at[pl.ds(0, 1)],              # dummy src: wait needs shape only
            row_buf.at[slot, pl.ds(g, 1)],
            sems.at[slot, g],
        ).wait()

    rows = row_buf[slot]                        # (G, D)
    if scale != 1.0:                            # trace-time skip when scale == 1
        rows = rows / scale
    out_ref[...] = rows.astype(out_ref.dtype)


def embed_ids(ids, weight, scale=ENC_EMB_SCALE):
    """ids: [B, S] int, weight: [V, D] f32 -> [B, S, D] f32 (exact gather)."""
    B, S = ids.shape
    V, D = weight.shape
    M = B * S
    G = 32 if M >= 32 else 8                    # tokens gathered per grid step
    M_pad = _round_up(M, G)

    # Clamp: Pallas does not bounds-check data-dependent DMA sources.
    # TODO(synk): torch.nn.Embedding would raise on out-of-range ids.
    ids_flat = jnp.clip(ids.reshape(M).astype(jnp.int32), 0, V - 1)
    if M_pad != M:
        ids_flat = jnp.pad(ids_flat, (0, M_pad - M))

    out = pl.pallas_call(
        functools.partial(_gather_kernel, G=G, scale=scale),
        out_shape=jax.ShapeDtypeStruct((M_pad, D), weight.dtype),
        grid_spec=pltpu.PrefetchScalarGridSpec(
            num_scalar_prefetch=1,              # ids -> SMEM, also fed to index_maps
            grid=(M_pad // G,),
            in_specs=[pl.BlockSpec(memory_space=pl.ANY)],     # weight stays in HBM
            out_specs=pl.BlockSpec((G, D), lambda t, ids_sref: (t, 0)),
            scratch_shapes=[
                pltpu.VMEM((2, G, D), weight.dtype),
                pltpu.SemaphoreType.DMA((2, G)),
            ],
        ),
        # "arbitrary": the cross-step prefetch chain assumes sequential grid
        # execution on one core (the t==0 priming would break under megacore).
        compiler_params=pltpu.CompilerParams(
            dimension_semantics=("arbitrary",)),
    )(ids_flat, weight)

    if M_pad != M:
        out = out[:M]
    return out.reshape(B, S, D)


# ----------------------------------------------------------------------------
# Soft-mask path: (B*S, V) @ (V, D) tiled for the MXU.
#   M tiled up to 512 (cuts weight re-streams), V tiled lane-aligned as a
#   K-reduction axis (never collapsing to the full vocab), optional D tiling
#   only when the M grid alone can't feed both v7x TensorCores.  The f32 mask
#   is cast to bf16 per tile in-kernel (under the MXU), the output block is
#   the f32 accumulator (resident across K).
# ----------------------------------------------------------------------------
def _soft_matmul_kernel(mask_ref, w_ref, out_ref, *, scale, v_true, tk, ragged_k):
    k = pl.program_id(2)

    @pl.when(k == 0)
    def _():
        out_ref[...] = jnp.zeros_like(out_ref)

    m = mask_ref[...]                           # f32 tile, streamed once from HBM
    w = w_ref[...]                              # bf16 tile (cached at model init)
    if ragged_k:
        # Last K block overhangs the true vocab: zero both tails so garbage
        # (possibly NaN) OOB data cannot contaminate the accumulation.
        col_ids = k * tk + lax.broadcasted_iota(jnp.int32, m.shape, 1)
        m = jnp.where(col_ids < v_true, m, 0.0)
        row_ids = k * tk + lax.broadcasted_iota(jnp.int32, w.shape, 0)
        w = jnp.where(row_ids < v_true, w, jnp.zeros_like(w))

    out_ref[...] += jnp.dot(m.astype(w.dtype), w,
                            preferred_element_type=jnp.float32)

    if scale != 1.0:                            # trace-time skip when scale == 1
        @pl.when(k == pl.num_programs(2) - 1)
        def _():
            out_ref[...] = out_ref[...] / scale


def _pick_tk(V):
    """Lane-aligned K (=vocab) tile; never falls back to a huge full-V tile."""
    for c in (1024, 512, 256, 128):
        if V % c == 0:
            return c, False
    if V < 1024:
        return V, False          # full-dim block is always legal and small
    return 1024, True            # cdiv K grid + in-kernel tail masking


def _pick_tn(D, grid_m):
    """N (=D) tile: single block unless the M grid can't feed 2 TCs (v7x)."""
    if grid_m < 2 and D > 128 and D % 128 == 0:
        return max(128, (D // 2) // 128 * 128)
    return D


def embed_soft(mask, weight, scale=ENC_EMB_SCALE):
    """mask: [B, S, V] f32, weight: [V, D] (bf16 preferred) -> [B, S, D] f32."""
    B, S, V = mask.shape
    Vw, D = weight.shape
    assert V == Vw
    M = B * S
    mask2 = mask.reshape(M, V)                  # no wrapper-side dtype cast pass

    tm = min(512, _round_up(M, 8))
    tk, ragged_k = _pick_tk(V)
    grid_m = pl.cdiv(M, tm)
    tn = _pick_tn(D, grid_m)
    grid = (grid_m, pl.cdiv(D, tn), pl.cdiv(V, tk))

    out = pl.pallas_call(
        functools.partial(_soft_matmul_kernel, scale=scale,
                          v_true=V, tk=tk, ragged_k=ragged_k),
        out_shape=jax.ShapeDtypeStruct((M, D), jnp.float32),
        grid_spec=pltpu.PrefetchScalarGridSpec(
            num_scalar_prefetch=0,
            grid=grid,
            in_specs=[
                pl.BlockSpec((tm, tk), lambda i, n, k: (i, k)),
                pl.BlockSpec((tk, tn), lambda i, n, k: (k, n)),
            ],
            out_specs=pl.BlockSpec((tm, tn), lambda i, n, k: (i, n)),
        ),
        compiler_params=pltpu.CompilerParams(
            dimension_semantics=("parallel", "parallel", "arbitrary")),
    )(mask2, weight)
    return out.reshape(B, S, D)


# ----------------------------------------------------------------------------
# Model wrapper (embedding front-end only).
# ----------------------------------------------------------------------------
class PallasEmbeddingModel:
    """Pallas stand-in for Helsinki Model's Embedding_ front-end."""

    def __init__(self, vocab_size, d_model, key):
        self.vocab_size = vocab_size
        self.d_model = d_model
        # Deterministic synthetic table standing in for encoder.embed_tokens.
        self.weight = (jax.random.normal(key, (vocab_size, d_model),
                                         dtype=jnp.float32) * 0.02)
        # bf16 copy cached once (hoisted out of the hot path, per review).
        # TODO(synk): optional fp8 weight cache for v7x.
        self.weight_bf16 = self.weight.astype(jnp.bfloat16)
        self.enc_emb_scale = ENC_EMB_SCALE

    def embedding(self, mask):
        # Mirrors Embedding_.forward dispatch on ndim/dtype.
        if mask.ndim == 2:
            assert jnp.issubdtype(mask.dtype, jnp.integer)
            return embed_ids(mask, self.weight, self.enc_emb_scale)
        assert jnp.issubdtype(mask.dtype, jnp.floating)
        return embed_soft(mask, self.weight_bf16, self.enc_emb_scale)

    def forward(self, input_ids, input_attn, target_ids=None, target_attn=None):
        inp_emb = self.embedding(input_ids)     # already divided by enc_emb_scale
        # TODO(synk): full pretrained seq2seq transformer (self.model(...)) is
        # not reproducible without the 'HelsinkiBASE.pt' checkpoint.
        return inp_emb


if __name__ == "__main__":
    key = jax.random.PRNGKey(0)
    k_w, k_ids, k_mask, k_w2, k_mask2 = jax.random.split(key, 5)

    B, S, V, D = 2, 8, 64, 128
    model = PallasEmbeddingModel(vocab_size=V, d_model=D, key=k_w)

    input_ids = jax.random.randint(k_ids, (B, S), 0, V, dtype=jnp.int32)
    input_attn = jnp.ones((B, S), dtype=jnp.float32)
    soft_mask = jax.nn.softmax(
        jax.random.normal(k_mask, (B, S, V), dtype=jnp.float32), axis=-1)

    # Hard (long-id) path: exact f32 batched DMA gather.
    emb_hard = jax.block_until_ready(model.forward(input_ids, input_attn))
    ref_hard = model.weight[input_ids] / ENC_EMB_SCALE
    assert emb_hard.shape == (B, S, D)
    assert jnp.allclose(emb_hard, ref_hard, atol=1e-6), "lookup path mismatch"

    # Soft (float-mask) path: in-kernel bf16 cast, MXU matmul, f32 accumulation.
    emb_soft = jax.block_until_ready(model.embedding(soft_mask))
    ref_soft = jnp.matmul(soft_mask, model.weight) / ENC_EMB_SCALE
    assert emb_soft.shape == (B, S, D)
    assert jnp.allclose(emb_soft, ref_soft, atol=5e-3), "soft path mismatch"

    # Ragged-vocab soft path (exercises the cdiv K grid + in-kernel tail mask
    # that replaces the old full-V tile fallback).
    V2 = 1056
    model2 = PallasEmbeddingModel(vocab_size=V2, d_model=D, key=k_w2)
    soft_mask2 = jax.nn.softmax(
        jax.random.normal(k_mask2, (B, S, V2), dtype=jnp.float32), axis=-1)
    emb_soft2 = jax.block_until_ready(model2.embedding(soft_mask2))
    ref_soft2 = jnp.matmul(soft_mask2, model2.weight) / ENC_EMB_SCALE
    assert emb_soft2.shape == (B, S, D)
    assert jnp.allclose(emb_soft2, ref_soft2, atol=5e-3), "ragged soft mismatch"

    print("KERNEL_OK")
</pallas_src>

<mosaic_0001>
module attributes {stable_mosaic.version = 11 : i64} {
  func.func @_gather_kernel(%arg0: i32, %arg1: memref<16xi32, #tpu.memory_space<smem>>, %arg2: memref<64x128xf32, #tpu.memory_space<any>>, %arg3: memref<8x128xf32, #tpu.memory_space<vmem>>, %arg4: memref<2x8x128xf32, #tpu.memory_space<vmem>>, %arg5: memref<2x8x!tpu.dma_semaphore, #tpu.memory_space<semaphore_mem>>) attributes {dimension_semantics = [#tpu.dimension_semantics<arbitrary>], iteration_bounds = array<i64: 2>, scalar_prefetch = 1 : i64, scratch_operands = 2 : i64, tpu.core_type = #tpu.core_type<tc>, window_params = [{}, {transform_indices = @transform_1, window_bounds = array<i64: 8, 128>}]} {
    %c0_i32 = arith.constant 0 : i32
    %0 = arith.cmpi eq, %arg0, %c0_i32 : i32
    %1 = arith.extui %0 : i1 to i32
    %c0_i32_0 = arith.constant 0 : i32
    %2 = arith.cmpi ne, %1, %c0_i32_0 : i32
    scf.if %2 {
      %c0_41 = arith.constant 0 : index
      %52 = memref.load %arg1[%c0_41] : memref<16xi32, #tpu.memory_space<smem>>
      %c0_i32_42 = arith.constant 0 : i32
      %c0_i32_43 = arith.constant 0 : i32
      %c0_i32_44 = arith.constant 0 : i32
      %c0_i32_45 = arith.constant 0 : i32
      %53 = tpu.memref_slice %arg2[%52, %c0_i32_45] : memref<64x128xf32, #tpu.memory_space<any>> -> memref<1x128xf32, #tpu.memory_space<any>>
      %c0_i32_46 = arith.constant 0 : i32
      %c0_i32_47 = arith.constant 0 : i32
      %54 = tpu.memref_slice %arg4[%c0_i32_42, %c0_i32_46, %c0_i32_47] : memref<2x8x128xf32, #tpu.memory_space<vmem>> -> memref<1x1x128xf32, #tpu.memory_space<vmem>>
      %55 = tpu.memref_squeeze %54 : memref<1x1x128xf32, #tpu.memory_space<vmem>> -> memref<1x128xf32, #tpu.memory_space<vmem>>
      %56 = tpu.memref_slice %arg5[%c0_i32_43, %c0_i32_44] : memref<2x8x!tpu.dma_semaphore, #tpu.memory_space<semaphore_mem>> -> memref<1x1x!tpu.dma_semaphore, #tpu.memory_space<semaphore_mem>>
      %57 = tpu.memref_squeeze %56 : memref<1x1x!tpu.dma_semaphore, #tpu.memory_space<semaphore_mem>> -> memref<!tpu.dma_semaphore, #tpu.memory_space<semaphore_mem>>
      tpu.enqueue_dma source(%53 : memref<1x128xf32, #tpu.memory_space<any>>) target(%55 : memref<1x128xf32, #tpu.memory_space<vmem>>) target_semaphore(%57 : memref<!tpu.dma_semaphore, #tpu.memory_space<semaphore_mem>>)
      %c1 = arith.constant 1 : index
      %58 = memref.load %arg1[%c1] : memref<16xi32, #tpu.memory_space<smem>>
      %c0_i32_48 = arith.constant 0 : i32
      %c0_i32_49 = arith.constant 0 : i32
      %c1_i32_50 = arith.constant 1 : i32
      %c0_i32_51 = arith.constant 0 : i32
      %59 = tpu.memref_slice %arg2[%58, %c0_i32_51] : memref<64x128xf32, #tpu.memory_space<any>> -> memref<1x128xf32, #tpu.memory_space<any>>
      %c1_i32_52 = arith.constant 1 : i32
      %c0_i32_53 = arith.constant 0 : i32
      %60 = tpu.memref_slice %arg4[%c0_i32_48, %c1_i32_52, %c0_i32_53] : memref<2x8x128xf32, #tpu.memory_space<vmem>> -> memref<1x1x128xf32, #tpu.memory_space<vmem>>
      %61 = tpu.memref_squeeze %60 : memref<1x1x128xf32, #tpu.memory_space<vmem>> -> memref<1x128xf32, #tpu.memory_space<vmem>>
      %62 = tpu.memref_slice %arg5[%c0_i32_49, %c1_i32_50] : memref<2x8x!tpu.dma_semaphore, #tpu.memory_space<semaphore_mem>> -> memref<1x1x!tpu.dma_semaphore, #tpu.memory_space<semaphore_mem>>
      %63 = tpu.memref_squeeze %62 : memref<1x1x!tpu.dma_semaphore, #tpu.memory_space<semaphore_mem>> -> memref<!tpu.dma_semaphore, #tpu.memory_space<semaphore_mem>>
      tpu.enqueue_dma source(%59 : memref<1x128xf32, #tpu.memory_space<any>>) target(%61 : memref<1x128xf32, #tpu.memory_space<vmem>>) target_semaphore(%63 : memref<!tpu.dma_semaphore, #tpu.memory_space<semaphore_mem>>)
      %c2 = arith.constant 2 : index
      %64 = memref.load %arg1[%c2] : memref<16xi32, #tpu.memory_space<smem>>
      %c0_i32_54 = arith.constant 0 : i32
      %c0_i32_55 = arith.constant 0 : i32
      %c2_i32_56 = arith.constant 2 : i32
      %c0_i32_57 = arith.constant 0 : i32
      %65 = tpu.memref_slice %arg2[%64, %c0_i32_57] : memref<64x128xf32, #tpu.memory_space<any>> -> memref<1x128xf32, #tpu.memory_space<any>>
      %c2_i32_58 = arith.constant 2 : i32
      %c0_i32_59 = arith.constant 0 : i32
      %66 = tpu.memref_slice %arg4[%c0_i32_54, %c2_i32_58, %c0_i32_59] : memref<2x8x128xf32, #tpu.memory_space<vmem>> -> memref<1x1x128xf32, #tpu.memory_space<vmem>>
      %67 = tpu.memref_squeeze %66 : memref<1x1x128xf32, #tpu.memory_space<vmem>> -> memref<1x128xf32, #tpu.memory_space<vmem>>
      %68 = tpu.memref_slice %arg5[%c0_i32_55, %c2_i32_56] : memref<2x8x!tpu.dma_semaphore, #tpu.memory_space<semaphore_mem>> -> memref<1x1x!tpu.dma_semaphore, #tpu.memory_space<semaphore_mem>>
      %69 = tpu.memref_squeeze %68 : memref<1x1x!tpu.dma_semaphore, #tpu.memory_space<semaphore_mem>> -> memref<!tpu.dma_semaphore, #tpu.memory_space<semaphore_mem>>
      tpu.enqueue_dma source(%65 : memref<1x128xf32, #tpu.memory_space<any>>) target(%67 : memref<1x128xf32, #tpu.memory_space<vmem>>) target_semaphore(%69 : memref<!tpu.dma_semaphore, #tpu.memory_space<semaphore_mem>>)
      %c3 = arith.constant 3 : index
      %70 = memref.load %arg1[%c3] : memref<16xi32, #tpu.memory_space<smem>>
      %c0_i32_60 = arith.constant 0 : i32
      %c0_i32_61 = arith.constant 0 : i32
      %c3_i32_62 = arith.constant 3 : i32
      %c0_i32_63 = arith.constant 0 : i32
      %71 = tpu.memref_slice %arg2[%70, %c0_i32_63] : memref<64x128xf32, #tpu.memory_space<any>> -> memref<1x128xf32, #tpu.memory_space<any>>
      %c3_i32_64 = arith.constant 3 : i32
      %c0_i32_65 = arith.constant 0 : i32
      %72 = tpu.memref_slice %arg4[%c0_i32_60, %c3_i32_64, %c0_i32_65] : memref<2x8x128xf32, #tpu.memory_space<vmem>> -> memref<1x1x128xf32, #tpu.memory_space<vmem>>
      %73 = tpu.memref_squeeze %72 : memref<1x1x128xf32, #tpu.memory_space<vmem>> -> memref<1x128xf32, #tpu.memory_space<vmem>>
      %74 = tpu.memref_slice %arg5[%c0_i32_61, %c3_i32_62] : memref<2x8x!tpu.dma_semaphore, #tpu.memory_space<semaphore_mem>> -> memref<1x1x!tpu.dma_semaphore, #tpu.memory_space<semaphore_mem>>
      %75 = tpu.memref_squeeze %74 : memref<1x1x!tpu.dma_semaphore, #tpu.memory_space<semaphore_mem>> -> memref<!tpu.dma_semaphore, #tpu.memory_space<semaphore_mem>>
      tpu.enqueue_dma source(%71 : memref<1x128xf32, #tpu.memory_space<any>>) target(%73 : memref<1x128xf32, #tpu.memory_space<vmem>>) target_semaphore(%75 : memref<!tpu.dma_semaphore, #tpu.memory_space<semaphore_mem>>)
      %c4 = arith.constant 4 : index
      %76 = memref.load %arg1[%c4] : memref<16xi32, #tpu.memory_space<smem>>
      %c0_i32_66 = arith.constant 0 : i32
      %c0_i32_67 = arith.constant 0 : i32
      %c4_i32_68 = arith.constant 4 : i32
      %c0_i32_69 = arith.constant 0 : i32
      %77 = tpu.memref_slice %arg2[%76, %c0_i32_69] : memref<64x128xf32, #tpu.memory_space<any>> -> memref<1x128xf32, #tpu.memory_space<any>>
      %c4_i32_70 = arith.constant 4 : i32
      %c0_i32_71 = arith.constant 0 : i32
      %78 = tpu.memref_slice %arg4[%c0_i32_66, %c4_i32_70, %c0_i32_71] : memref<2x8x128xf32, #tpu.memory_space<vmem>> -> memref<1x1x128xf32, #tpu.memory_space<vmem>>
      %79 = tpu.memref_squeeze %78 : memref<1x1x128xf32, #tpu.memory_space<vmem>> -> memref<1x128xf32, #tpu.memory_space<vmem>>
      %80 = tpu.memref_slice %arg5[%c0_i32_67, %c4_i32_68] : memref<2x8x!tpu.dma_semaphore, #tpu.memory_space<semaphore_mem>> -> memref<1x1x!tpu.dma_semaphore, #tpu.memory_space<semaphore_mem>>
      %81 = tpu.memref_squeeze %80 : memref<1x1x!tpu.dma_semaphore, #tpu.memory_space<semaphore_mem>> -> memref<!tpu.dma_semaphore, #tpu.memory_space<semaphore_mem>>
      tpu.enqueue_dma source(%77 : memref<1x128xf32, #tpu.memory_space<any>>) target(%79 : memref<1x128xf32, #tpu.memory_space<vmem>>) target_semaphore(%81 : memref<!tpu.dma_semaphore, #tpu.memory_space<semaphore_mem>>)
      %c5 = arith.constant 5 : index
      %82 = memref.load %arg1[%c5] : memref<16xi32, #tpu.memory_space<smem>>
      %c0_i32_72 = arith.constant 0 : i32
      %c0_i32_73 = arith.constant 0 : i32
      %c5_i32_74 = arith.constant 5 : i32
      %c0_i32_75 = arith.constant 0 : i32
      %83 = tpu.memref_slice %arg2[%82, %c0_i32_75] : memref<64x128xf32, #tpu.memory_space<any>> -> memref<1x128xf32, #tpu.memory_space<any>>
      %c5_i32_76 = arith.constant 5 : i32
      %c0_i32_77 = arith.constant 0 : i32
      %84 = tpu.memref_slice %arg4[%c0_i32_72, %c5_i32_76, %c0_i32_77] : memref<2x8x128xf32, #tpu.memory_space<vmem>> -> memref<1x1x128xf32, #tpu.memory_space<vmem>>
      %85 = tpu.memref_squeeze %84 : memref<1x1x128xf32, #tpu.memory_space<vmem>> -> memref<1x128xf32, #tpu.memory_space<vmem>>
      %86 = tpu.memref_slice %arg5[%c0_i32_73, %c5_i32_74] : memref<2x8x!tpu.dma_semaphore, #tpu.memory_space<semaphore_mem>> -> memref<1x1x!tpu.dma_semaphore, #tpu.memory_space<semaphore_mem>>
      %87 = tpu.memref_squeeze %86 : memref<1x1x!tpu.dma_semaphore, #tpu.memory_space<semaphore_mem>> -> memref<!tpu.dma_semaphore, #tpu.memory_space<semaphore_mem>>
      tpu.enqueue_dma source(%83 : memref<1x128xf32, #tpu.memory_space<any>>) target(%85 : memref<1x128xf32, #tpu.memory_space<vmem>>) target_semaphore(%87 : memref<!tpu.dma_semaphore, #tpu.memory_space<semaphore_mem>>)
      %c6 = arith.constant 6 : index
      %88 = memref.load %arg1[%c6] : memref<16xi32, #tpu.memory_space<smem>>
      %c0_i32_78 = arith.constant 0 : i32
      %c0_i32_79 = arith.constant 0 : i32
      %c6_i32_80 = arith.constant 6 : i32
      %c0_i32_81 = arith.constant 0 : i32
      %89 = tpu.memref_slice %arg2[%88, %c0_i32_81] : memref<64x128xf32, #tpu.memory_space<any>> -> memref<1x128xf32, #tpu.memory_space<any>>
      %c6_i32_82 = arith.constant 6 : i32
      %c0_i32_83 = arith.constant 0 : i32
      %90 = tpu.memref_slice %arg4[%c0_i32_78, %c6_i32_82, %c0_i32_83] : memref<2x8x128xf32, #tpu.memory_space<vmem>> -> memref<1x1x128xf32, #tpu.memory_space<vmem>>
      %91 = tpu.memref_squeeze %90 : memref<1x1x128xf32, #tpu.memory_space<vmem>> -> memref<1x128xf32, #tpu.memory_space<vmem>>
      %92 = tpu.memref_slice %arg5[%c0_i32_79, %c6_i32_80] : memref<2x8x!tpu.dma_semaphore, #tpu.memory_space<semaphore_mem>> -> memref<1x1x!tpu.dma_semaphore, #tpu.memory_space<semaphore_mem>>
      %93 = tpu.memref_squeeze %92 : memref<1x1x!tpu.dma_semaphore, #tpu.memory_space<semaphore_mem>> -> memref<!tpu.dma_semaphore, #tpu.memory_space<semaphore_mem>>
      tpu.enqueue_dma source(%89 : memref<1x128xf32, #tpu.memory_space<any>>) target(%91 : memref<1x128xf32, #tpu.memory_space<vmem>>) target_semaphore(%93 : memref<!tpu.dma_semaphore, #tpu.memory_space<semaphore_mem>>)
      %c7 = arith.constant 7 : index
      %94 = memref.load %arg1[%c7] : memref<16xi32, #tpu.memory_space<smem>>
      %c0_i32_84 = arith.constant 0 : i32
      %c0_i32_85 = arith.constant 0 : i32
      %c7_i32_86 = arith.constant 7 : i32
      %c0_i32_87 = arith.constant 0 : i32
      %95 = tpu.memref_slice %arg2[%94, %c0_i32_87] : memref<64x128xf32, #tpu.memory_space<any>> -> memref<1x128xf32, #tpu.memory_space<any>>
      %c7_i32_88 = arith.constant 7 : i32
      %c0_i32_89 = arith.constant 0 : i32
      %96 = tpu.memref_slice %arg4[%c0_i32_84, %c7_i32_88, %c0_i32_89] : memref<2x8x128xf32, #tpu.memory_space<vmem>> -> memref<1x1x128xf32, #tpu.memory_space<vmem>>
      %97 = tpu.memref_squeeze %96 : memref<1x1x128xf32, #tpu.memory_space<vmem>> -> memref<1x128xf32, #tpu.memory_space<vmem>>
      %98 = tpu.memref_slice %arg5[%c0_i32_85, %c7_i32_86] : memref<2x8x!tpu.dma_semaphore, #tpu.memory_space<semaphore_mem>> -> memref<1x1x!tpu.dma_semaphore, #tpu.memory_space<semaphore_mem>>
      %99 = tpu.memref_squeeze %98 : memref<1x1x!tpu.dma_semaphore, #tpu.memory_space<semaphore_mem>> -> memref<!tpu.dma_semaphore, #tpu.memory_space<semaphore_mem>>
      tpu.enqueue_dma source(%95 : memref<1x128xf32, #tpu.memory_space<any>>) target(%97 : memref<1x128xf32, #tpu.memory_space<vmem>>) target_semaphore(%99 : memref<!tpu.dma_semaphore, #tpu.memory_space<semaphore_mem>>)
    } else {
    }
    %c1_i32 = arith.constant 1 : i32
    %3 = arith.addi %arg0, %c1_i32 : i32
    %c2_i32 = arith.constant 2 : i32
    %4 = arith.cmpi slt, %3, %c2_i32 : i32
    %5 = arith.extui %4 : i1 to i32
    %c0_i32_1 = arith.constant 0 : i32
    %6 = arith.cmpi ne, %5, %c0_i32_1 : i32
    scf.if %6 {
      %c1_i32_41 = arith.constant 1 : i32
      %52 = arith.addi %arg0, %c1_i32_41 : i32
      %c1_i32_42 = arith.constant 1 : i32
      %53 = arith.addi %arg0, %c1_i32_42 : i32
      %c1_i32_43 = arith.constant 1 : i32
      %54 = arith.andi %53, %c1_i32_43 : i32
      %c8_i32 = arith.constant 8 : i32
      %55 = arith.muli %52, %c8_i32 : i32
      %c0_i32_44 = arith.constant 0 : i32
      %56 = arith.addi %55, %c0_i32_44 : i32
      %57 = arith.index_cast %56 : i32 to index
      %58 = memref.load %arg1[%57] : memref<16xi32, #tpu.memory_space<smem>>
      %c0_i32_45 = arith.constant 0 : i32
      %c0_i32_46 = arith.constant 0 : i32
      %59 = tpu.memref_slice %arg2[%58, %c0_i32_46] : memref<64x128xf32, #tpu.memory_space<any>> -> memref<1x128xf32, #tpu.memory_space<any>>
      %c0_i32_47 = arith.constant 0 : i32
      %c0_i32_48 = arith.constant 0 : i32
      %60 = tpu.memref_slice %arg4[%54, %c0_i32_47, %c0_i32_48] : memref<2x8x128xf32, #tpu.memory_space<vmem>> -> memref<1x1x128xf32, #tpu.memory_space<vmem>>
      %61 = tpu.memref_squeeze %60 : memref<1x1x128xf32, #tpu.memory_space<vmem>> -> memref<1x128xf32, #tpu.memory_space<vmem>>
      %62 = tpu.memref_slice %arg5[%54, %c0_i32_45] : memref<2x8x!tpu.dma_semaphore, #tpu.memory_space<semaphore_mem>> -> memref<1x1x!tpu.dma_semaphore, #tpu.memory_space<semaphore_mem>>
      %63 = tpu.memref_squeeze %62 : memref<1x1x!tpu.dma_semaphore, #tpu.memory_space<semaphore_mem>> -> memref<!tpu.dma_semaphore, #tpu.memory_space<semaphore_mem>>
      tpu.enqueue_dma source(%59 : memref<1x128xf32, #tpu.memory_space<any>>) target(%61 : memref<1x128xf32, #tpu.memory_space<vmem>>) target_semaphore(%63 : memref<!tpu.dma_semaphore, #tpu.memory_space<semaphore_mem>>)
      %c8_i32_49 = arith.constant 8 : i32
      %64 = arith.muli %52, %c8_i32_49 : i32
      %c1_i32_50 = arith.constant 1 : i32
      %65 = arith.addi %64, %c1_i32_50 : i32
      %66 = arith.index_cast %65 : i32 to index
      %67 = memref.load %arg1[%66] : memref<16xi32, #tpu.memory_space<smem>>
      %c1_i32_51 = arith.constant 1 : i32
      %c0_i32_52 = arith.constant 0 : i32
      %68 = tpu.memref_slice %arg2[%67, %c0_i32_52] : memref<64x128xf32, #tpu.memory_space<any>> -> memref<1x128xf32, #tpu.memory_space<any>>
      %c1_i32_53 = arith.constant 1 : i32
      %c0_i32_54 = arith.constant 0 : i32
      %69 = tpu.memref_slice %arg4[%54, %c1_i32_53, %c0_i32_54] : memref<2x8x128xf32, #tpu.memory_space<vmem>> -> memref<1x1x128xf32, #tpu.memory_space<vmem>>
      %70 = tpu.memref_squeeze %69 : memref<1x1x128xf32, #tpu.memory_space<vmem>> -> memref<1x128xf32, #tpu.memory_space<vmem>>
      %71 = tpu.memref_slice %arg5[%54, %c1_i32_51] : memref<2x8x!tpu.dma_semaphore, #tpu.memory_space<semaphore_mem>> -> memref<1x1x!tpu.dma_semaphore, #tpu.memory_space<semaphore_mem>>
      %72 = tpu.memref_squeeze %71 : memref<1x1x!tpu.dma_semaphore, #tpu.memory_space<semaphore_mem>> -> memref<!tpu.dma_semaphore, #tpu.memory_space<semaphore_mem>>
      tpu.enqueue_dma source(%68 : memref<1x128xf32, #tpu.memory_space<any>>) target(%70 : memref<1x128xf32, #tpu.memory_space<vmem>>) target_semaphore(%72 : memref<!tpu.dma_semaphore, #tpu.memory_space<semaphore_mem>>)
      %c8_i32_55 = arith.constant 8 : i32
      %73 = arith.muli %52, %c8_i32_55 : i32
      %c2_i32_56 = arith.constant 2 : i32
      %74 = arith.addi %73, %c2_i32_56 : i32
      %75 = arith.index_cast %74 : i32 to index
      %76 = memref.load %arg1[%75] : memref<16xi32, #tpu.memory_space<smem>>
      %c2_i32_57 = arith.constant 2 : i32
      %c0_i32_58 = arith.constant 0 : i32
      %77 = tpu.memref_slice %arg2[%76, %c0_i32_58] : memref<64x128xf32, #tpu.memory_space<any>> -> memref<1x128xf32, #tpu.memory_space<any>>
      %c2_i32_59 = arith.constant 2 : i32
      %c0_i32_60 = arith.constant 0 : i32
      %78 = tpu.memref_slice %arg4[%54, %c2_i32_59, %c0_i32_60] : memref<2x8x128xf32, #tpu.memory_space<vmem>> -> memref<1x1x128xf32, #tpu.memory_space<vmem>>
      %79 = tpu.memref_squeeze %78 : memref<1x1x128xf32, #tpu.memory_space<vmem>> -> memref<1x128xf32, #tpu.memory_space<vmem>>
      %80 = tpu.memref_slice %arg5[%54, %c2_i32_57] : memref<2x8x!tpu.dma_semaphore, #tpu.memory_space<semaphore_mem>> -> memref<1x1x!tpu.dma_semaphore, #tpu.memory_space<semaphore_mem>>
      %81 = tpu.memref_squeeze %80 : memref<1x1x!tpu.dma_semaphore, #tpu.memory_space<semaphore_mem>> -> memref<!tpu.dma_semaphore, #tpu.memory_space<semaphore_mem>>
      tpu.enqueue_dma source(%77 : memref<1x128xf32, #tpu.memory_space<any>>) target(%79 : memref<1x128xf32, #tpu.memory_space<vmem>>) target_semaphore(%81 : memref<!tpu.dma_semaphore, #tpu.memory_space<semaphore_mem>>)
      %c8_i32_61 = arith.constant 8 : i32
      %82 = arith.muli %52, %c8_i32_61 : i32
      %c3_i32_62 = arith.constant 3 : i32
      %83 = arith.addi %82, %c3_i32_62 : i32
      %84 = arith.index_cast %83 : i32 to index
      %85 = memref.load %arg1[%84] : memref<16xi32, #tpu.memory_space<smem>>
      %c3_i32_63 = arith.constant 3 : i32
      %c0_i32_64 = arith.constant 0 : i32
      %86 = tpu.memref_slice %arg2[%85, %c0_i32_64] : memref<64x128xf32, #tpu.memory_space<any>> -> memref<1x128xf32, #tpu.memory_space<any>>
      %c3_i32_65 = arith.constant 3 : i32
      %c0_i32_66 = arith.constant 0 : i32
      %87 = tpu.memref_slice %arg4[%54, %c3_i32_65, %c0_i32_66] : memref<2x8x128xf32, #tpu.memory_space<vmem>> -> memref<1x1x128xf32, #tpu.memory_space<vmem>>
      %88 = tpu.memref_squeeze %87 : memref<1x1x128xf32, #tpu.memory_space<vmem>> -> memref<1x128xf32, #tpu.memory_space<vmem>>
      %89 = tpu.memref_slice %arg5[%54, %c3_i32_63] : memref<2x8x!tpu.dma_semaphore, #tpu.memory_space<semaphore_mem>> -> memref<1x1x!tpu.dma_semaphore, #tpu.memory_space<semaphore_mem>>
      %90 = tpu.memref_squeeze %89 : memref<1x1x!tpu.dma_semaphore, #tpu.memory_space<semaphore_mem>> -> memref<!tpu.dma_semaphore, #tpu.memory_space<semaphore_mem>>
      tpu.enqueue_dma source(%86 : memref<1x128xf32, #tpu.memory_space<any>>) target(%88 : memref<1x128xf32, #tpu.memory_space<vmem>>) target_semaphore(%90 : memref<!tpu.dma_semaphore, #tpu.memory_space<semaphore_mem>>)
      %c8_i32_67 = arith.constant 8 : i32
      %91 = arith.muli %52, %c8_i32_67 : i32
      %c4_i32_68 = arith.constant 4 : i32
      %92 = arith.addi %91, %c4_i32_68 : i32
      %93 = arith.index_cast %92 : i32 to index
      %94 = memref.load %arg1[%93] : memref<16xi32, #tpu.memory_space<smem>>
      %c4_i32_69 = arith.constant 4 : i32
      %c0_i32_70 = arith.constant 0 : i32
      %95 = tpu.memref_slice %arg2[%94, %c0_i32_70] : memref<64x128xf32, #tpu.memory_space<any>> -> memref<1x128xf32, #tpu.memory_space<any>>
      %c4_i32_71 = arith.constant 4 : i32
      %c0_i32_72 = arith.constant 0 : i32
      %96 = tpu.memref_slice %arg4[%54, %c4_i32_71, %c0_i32_72] : memref<2x8x128xf32, #tpu.memory_space<vmem>> -> memref<1x1x128xf32, #tpu.memory_space<vmem>>
      %97 = tpu.memref_squeeze %96 : memref<1x1x128xf32, #tpu.memory_space<vmem>> -> memref<1x128xf32, #tpu.memory_space<vmem>>
      %98 = tpu.memref_slice %arg5[%54, %c4_i32_69] : memref<2x8x!tpu.dma_semaphore, #tpu.memory_space<semaphore_mem>> -> memref<1x1x!tpu.dma_semaphore, #tpu.memory_space<semaphore_mem>>
      %99 = tpu.memref_squeeze %98 : memref<1x1x!tpu.dma_semaphore, #tpu.memory_space<semaphore_mem>> -> memref<!tpu.dma_semaphore, #tpu.memory_space<semaphore_mem>>
      tpu.enqueue_dma source(%95 : memref<1x128xf32, #tpu.memory_space<any>>) target(%97 : memref<1x128xf32, #tpu.memory_space<vmem>>) target_semaphore(%99 : memref<!tpu.dma_semaphore, #tpu.memory_space<semaphore_mem>>)
      %c8_i32_73 = arith.constant 8 : i32
      %100 = arith.muli %52, %c8_i32_73 : i32
      %c5_i32_74 = arith.constant 5 : i32
      %101 = arith.addi %100, %c5_i32_74 : i32
      %102 = arith.index_cast %101 : i32 to index
      %103 = memref.load %arg1[%102] : memref<16xi32, #tpu.memory_space<smem>>
      %c5_i32_75 = arith.constant 5 : i32
      %c0_i32_76 = arith.constant 0 : i32
      %104 = tpu.memref_slice %arg2[%103, %c0_i32_76] : memref<64x128xf32, #tpu.memory_space<any>> -> memref<1x128xf32, #tpu.memory_space<any>>
      %c5_i32_77 = arith.constant 5 : i32
      %c0_i32_78 = arith.constant 0 : i32
      %105 = tpu.memref_slice %arg4[%54, %c5_i32_77, %c0_i32_78] : memref<2x8x128xf32, #tpu.memory_space<vmem>> -> memref<1x1x128xf32, #tpu.memory_space<vmem>>
      %106 = tpu.memref_squeeze %105 : memref<1x1x128xf32, #tpu.memory_space<vmem>> -> memref<1x128xf32, #tpu.memory_space<vmem>>
      %107 = tpu.memref_slice %arg5[%54, %c5_i32_75] : memref<2x8x!tpu.dma_semaphore, #tpu.memory_space<semaphore_mem>> -> memref<1x1x!tpu.dma_semaphore, #tpu.memory_space<semaphore_mem>>
      %108 = tpu.memref_squeeze %107 : memref<1x1x!tpu.dma_semaphore, #tpu.memory_space<semaphore_mem>> -> memref<!tpu.dma_semaphore, #tpu.memory_space<semaphore_mem>>
      tpu.enqueue_dma source(%104 : memref<1x128xf32, #tpu.memory_space<any>>) target(%106 : memref<1x128xf32, #tpu.memory_space<vmem>>) target_semaphore(%108 : memref<!tpu.dma_semaphore, #tpu.memory_space<semaphore_mem>>)
      %c8_i32_79 = arith.constant 8 : i32
      %109 = arith.muli %52, %c8_i32_79 : i32
      %c6_i32_80 = arith.constant 6 : i32
      %110 = arith.addi %109, %c6_i32_80 : i32
      %111 = arith.index_cast %110 : i32 to index
      %112 = memref.load %arg1[%111] : memref<16xi32, #tpu.memory_space<smem>>
      %c6_i32_81 = arith.constant 6 : i32
      %c0_i32_82 = arith.constant 0 : i32
      %113 = tpu.memref_slice %arg2[%112, %c0_i32_82] : memref<64x128xf32, #tpu.memory_space<any>> -> memref<1x128xf32, #tpu.memory_space<any>>
      %c6_i32_83 = arith.constant 6 : i32
      %c0_i32_84 = arith.constant 0 : i32
      %114 = tpu.memref_slice %arg4[%54, %c6_i32_83, %c0_i32_84] : memref<2x8x128xf32, #tpu.memory_space<vmem>> -> memref<1x1x128xf32, #tpu.memory_space<vmem>>
      %115 = tpu.memref_squeeze %114 : memref<1x1x128xf32, #tpu.memory_space<vmem>> -> memref<1x128xf32, #tpu.memory_space<vmem>>
      %116 = tpu.memref_slice %arg5[%54, %c6_i32_81] : memref<2x8x!tpu.dma_semaphore, #tpu.memory_space<semaphore_mem>> -> memref<1x1x!tpu.dma_semaphore, #tpu.memory_space<semaphore_mem>>
      %117 = tpu.memref_squeeze %116 : memref<1x1x!tpu.dma_semaphore, #tpu.memory_space<semaphore_mem>> -> memref<!tpu.dma_semaphore, #tpu.memory_space<semaphore_mem>>
      tpu.enqueue_dma source(%113 : memref<1x128xf32, #tpu.memory_space<any>>) target(%115 : memref<1x128xf32, #tpu.memory_space<vmem>>) target_semaphore(%117 : memref<!tpu.dma_semaphore, #tpu.memory_space<semaphore_mem>>)
      %c8_i32_85 = arith.constant 8 : i32
      %118 = arith.muli %52, %c8_i32_85 : i32
      %c7_i32_86 = arith.constant 7 : i32
      %119 = arith.addi %118, %c7_i32_86 : i32
      %120 = arith.index_cast %119 : i32 to index
      %121 = memref.load %arg1[%120] : memref<16xi32, #tpu.memory_space<smem>>
      %c7_i32_87 = arith.constant 7 : i32
      %c0_i32_88 = arith.constant 0 : i32
      %122 = tpu.memref_slice %arg2[%121, %c0_i32_88] : memref<64x128xf32, #tpu.memory_space<any>> -> memref<1x128xf32, #tpu.memory_space<any>>
      %c7_i32_89 = arith.constant 7 : i32
      %c0_i32_90 = arith.constant 0 : i32
      %123 = tpu.memref_slice %arg4[%54, %c7_i32_89, %c0_i32_90] : memref<2x8x128xf32, #tpu.memory_space<vmem>> -> memref<1x1x128xf32, #tpu.memory_space<vmem>>
      %124 = tpu.memref_squeeze %123 : memref<1x1x128xf32, #tpu.memory_space<vmem>> -> memref<1x128xf32, #tpu.memory_space<vmem>>
      %125 = tpu.memref_slice %arg5[%54, %c7_i32_87] : memref<2x8x!tpu.dma_semaphore, #tpu.memory_space<semaphore_mem>> -> memref<1x1x!tpu.dma_semaphore, #tpu.memory_space<semaphore_mem>>
      %126 = tpu.memref_squeeze %125 : memref<1x1x!tpu.dma_semaphore, #tpu.memory_space<semaphore_mem>> -> memref<!tpu.dma_semaphore, #tpu.memory_space<semaphore_mem>>
      tpu.enqueue_dma source(%122 : memref<1x128xf32, #tpu.memory_space<any>>) target(%124 : memref<1x128xf32, #tpu.memory_space<vmem>>) target_semaphore(%126 : memref<!tpu.dma_semaphore, #tpu.memory_space<semaphore_mem>>)
    } else {
    }
    %c1_i32_2 = arith.constant 1 : i32
    %7 = arith.andi %arg0, %c1_i32_2 : i32
    %c0_i32_3 = arith.constant 0 : i32
    %c0_i32_4 = arith.constant 0 : i32
    %c0_i32_5 = arith.constant 0 : i32
    %8 = tpu.memref_slice %arg2[%c0_i32_4, %c0_i32_5] : memref<64x128xf32, #tpu.memory_space<any>> -> memref<1x128xf32, #tpu.memory_space<any>>
    %c0_i32_6 = arith.constant 0 : i32
    %c0_i32_7 = arith.constant 0 : i32
    %9 = tpu.memref_slice %arg4[%7, %c0_i32_6, %c0_i32_7] : memref<2x8x128xf32, #tpu.memory_space<vmem>> -> memref<1x1x128xf32, #tpu.memory_space<vmem>>
    %10 = tpu.memref_squeeze %9 : memref<1x1x128xf32, #tpu.memory_space<vmem>> -> memref<1x128xf32, #tpu.memory_space<vmem>>
    %11 = tpu.memref_slice %arg5[%7, %c0_i32_3] : memref<2x8x!tpu.dma_semaphore, #tpu.memory_space<semaphore_mem>> -> memref<1x1x!tpu.dma_semaphore, #tpu.memory_space<semaphore_mem>>
    %12 = tpu.memref_squeeze %11 : memref<1x1x!tpu.dma_semaphore, #tpu.memory_space<semaphore_mem>> -> memref<!tpu.dma_semaphore, #tpu.memory_space<semaphore_mem>>
    tpu.wait_dma2 semaphore(%12 : memref<!tpu.dma_semaphore, #tpu.memory_space<semaphore_mem>>) src(%8 : memref<1x128xf32, #tpu.memory_space<any>>) dst(%10 : memref<1x128xf32, #tpu.memory_space<vmem>>)
    %c1_i32_8 = arith.constant 1 : i32
    %c0_i32_9 = arith.constant 0 : i32
    %c0_i32_10 = arith.constant 0 : i32
    %13 = tpu.memref_slice %arg2[%c0_i32_9, %c0_i32_10] : memref<64x128xf32, #tpu.memory_space<any>> -> memref<1x128xf32, #tpu.memory_space<any>>
    %c1_i32_11 = arith.constant 1 : i32
    %c0_i32_12 = arith.constant 0 : i32
    %14 = tpu.memref_slice %arg4[%7, %c1_i32_11, %c0_i32_12] : memref<2x8x128xf32, #tpu.memory_space<vmem>> -> memref<1x1x128xf32, #tpu.memory_space<vmem>>
    %15 = tpu.memref_squeeze %14 : memref<1x1x128xf32, #tpu.memory_space<vmem>> -> memref<1x128xf32, #tpu.memory_space<vmem>>
    %16 = tpu.memref_slice %arg5[%7, %c1_i32_8] : memref<2x8x!tpu.dma_semaphore, #tpu.memory_space<semaphore_mem>> -> memref<1x1x!tpu.dma_semaphore, #tpu.memory_space<semaphore_mem>>
    %17 = tpu.memref_squeeze %16 : memref<1x1x!tpu.dma_semaphore, #tpu.memory_space<semaphore_mem>> -> memref<!tpu.dma_semaphore, #tpu.memory_space<semaphore_mem>>
    tpu.wait_dma2 semaphore(%17 : memref<!tpu.dma_semaphore, #tpu.memory_space<semaphore_mem>>) src(%13 : memref<1x128xf32, #tpu.memory_space<any>>) dst(%15 : memref<1x128xf32, #tpu.memory_space<vmem>>)
    %c2_i32_13 = arith.constant 2 : i32
    %c0_i32_14 = arith.constant 0 : i32
    %c0_i32_15 = arith.constant 0 : i32
    %18 = tpu.memref_slice %arg2[%c0_i32_14, %c0_i32_15] : memref<64x128xf32, #tpu.memory_space<any>> -> memref<1x128xf32, #tpu.memory_space<any>>
    %c2_i32_16 = arith.constant 2 : i32
    %c0_i32_17 = arith.constant 0 : i32
    %19 = tpu.memref_slice %arg4[%7, %c2_i32_16, %c0_i32_17] : memref<2x8x128xf32, #tpu.memory_space<vmem>> -> memref<1x1x128xf32, #tpu.memory_space<vmem>>
    %20 = tpu.memref_squeeze %19 : memref<1x1x128xf32, #tpu.memory_space<vmem>> -> memref<1x128xf32, #tpu.memory_space<vmem>>
    %21 = tpu.memref_slice %arg5[%7, %c2_i32_13] : memref<2x8x!tpu.dma_semaphore, #tpu.memory_space<semaphore_mem>> -> memref<1x1x!tpu.dma_semaphore, #tpu.memory_space<semaphore_mem>>
    %22 = tpu.memref_squeeze %21 : memref<1x1x!tpu.dma_semaphore, #tpu.memory_space<semaphore_mem>> -> memref<!tpu.dma_semaphore, #tpu.memory_space<semaphore_mem>>
    tpu.wait_dma2 semaphore(%22 : memref<!tpu.dma_semaphore, #tpu.memory_space<semaphore_mem>>) src(%18 : memref<1x128xf32, #tpu.memory_space<any>>) dst(%20 : memref<1x128xf32, #tpu.memory_space<vmem>>)
    %c3_i32 = arith.constant 3 : i32
    %c0_i32_18 = arith.constant 0 : i32
    %c0_i32_19 = arith.constant 0 : i32
    %23 = tpu.memref_slice %arg2[%c0_i32_18, %c0_i32_19] : memref<64x128xf32, #tpu.memory_space<any>> -> memref<1x128xf32, #tpu.memory_space<any>>
    %c3_i32_20 = arith.constant 3 : i32
    %c0_i32_21 = arith.constant 0 : i32
    %24 = tpu.memref_slice %arg4[%7, %c3_i32_20, %c0_i32_21] : memref<2x8x128xf32, #tpu.memory_space<vmem>> -> memref<1x1x128xf32, #tpu.memory_space<vmem>>
    %25 = tpu.memref_squeeze %24 : memref<1x1x128xf32, #tpu.memory_space<vmem>> -> memref<1x128xf32, #tpu.memory_space<vmem>>
    %26 = tpu.memref_slice %arg5[%7, %c3_i32] : memref<2x8x!tpu.dma_semaphore, #tpu.memory_space<semaphore_mem>> -> memref<1x1x!tpu.dma_semaphore, #tpu.memory_space<semaphore_mem>>
    %27 = tpu.memref_squeeze %26 : memref<1x1x!tpu.dma_semaphore, #tpu.memory_space<semaphore_mem>> -> memref<!tpu.dma_semaphore, #tpu.memory_space<semaphore_mem>>
    tpu.wait_dma2 semaphore(%27 : memref<!tpu.dma_semaphore, #tpu.memory_space<semaphore_mem>>) src(%23 : memref<1x128xf32, #tpu.memory_space<any>>) dst(%25 : memref<1x128xf32, #tpu.memory_space<vmem>>)
    %c4_i32 = arith.constant 4 : i32
    %c0_i32_22 = arith.constant 0 : i32
    %c0_i32_23 = arith.constant 0 : i32
    %28 = tpu.memref_slice %arg2[%c0_i32_22, %c0_i32_23] : memref<64x128xf32, #tpu.memory_space<any>> -> memref<1x128xf32, #tpu.memory_space<any>>
    %c4_i32_24 = arith.constant 4 : i32
    %c0_i32_25 = arith.constant 0 : i32
    %29 = tpu.memref_slice %arg4[%7, %c4_i32_24, %c0_i32_25] : memref<2x8x128xf32, #tpu.memory_space<vmem>> -> memref<1x1x128xf32, #tpu.memory_space<vmem>>
    %30 = tpu.memref_squeeze %29 : memref<1x1x128xf32, #tpu.memory_space<vmem>> -> memref<1x128xf32, #tpu.memory_space<vmem>>
    %31 = tpu.memref_slice %arg5[%7, %c4_i32] : memref<2x8x!tpu.dma_semaphore, #tpu.memory_space<semaphore_mem>> -> memref<1x1x!tpu.dma_semaphore, #tpu.memory_space<semaphore_mem>>
    %32 = tpu.memref_squeeze %31 : memref<1x1x!tpu.dma_semaphore, #tpu.memory_space<semaphore_mem>> -> memref<!tpu.dma_semaphore, #tpu.memory_space<semaphore_mem>>
    tpu.wait_dma2 semaphore(%32 : memref<!tpu.dma_semaphore, #tpu.memory_space<semaphore_mem>>) src(%28 : memref<1x128xf32, #tpu.memory_space<any>>) dst(%30 : memref<1x128xf32, #tpu.memory_space<vmem>>)
    %c5_i32 = arith.constant 5 : i32
    %c0_i32_26 = arith.constant 0 : i32
    %c0_i32_27 = arith.constant 0 : i32
    %33 = tpu.memref_slice %arg2[%c0_i32_26, %c0_i32_27] : memref<64x128xf32, #tpu.memory_space<any>> -> memref<1x128xf32, #tpu.memory_space<any>>
    %c5_i32_28 = arith.constant 5 : i32
    %c0_i32_29 = arith.constant 0 : i32
    %34 = tpu.memref_slice %arg4[%7, %c5_i32_28, %c0_i32_29] : memref<2x8x128xf32, #tpu.memory_space<vmem>> -> memref<1x1x128xf32, #tpu.memory_space<vmem>>
    %35 = tpu.memref_squeeze %34 : memref<1x1x128xf32, #tpu.memory_space<vmem>> -> memref<1x128xf32, #tpu.memory_space<vmem>>
    %36 = tpu.memref_slice %arg5[%7, %c5_i32] : memref<2x8x!tpu.dma_semaphore, #tpu.memory_space<semaphore_mem>> -> memref<1x1x!tpu.dma_semaphore, #tpu.memory_space<semaphore_mem>>
    %37 = tpu.memref_squeeze %36 : memref<1x1x!tpu.dma_semaphore, #tpu.memory_space<semaphore_mem>> -> memref<!tpu.dma_semaphore, #tpu.memory_space<semaphore_mem>>
    tpu.wait_dma2 semaphore(%37 : memref<!tpu.dma_semaphore, #tpu.memory_space<semaphore_mem>>) src(%33 : memref<1x128xf32, #tpu.memory_space<any>>) dst(%35 : memref<1x128xf32, #tpu.memory_space<vmem>>)
    %c6_i32 = arith.constant 6 : i32
    %c0_i32_30 = arith.constant 0 : i32
    %c0_i32_31 = arith.constant 0 : i32
    %38 = tpu.memref_slice %arg2[%c0_i32_30, %c0_i32_31] : memref<64x128xf32, #tpu.memory_space<any>> -> memref<1x128xf32, #tpu.memory_space<any>>
    %c6_i32_32 = arith.constant 6 : i32
    %c0_i32_33 = arith.constant 0 : i32
    %39 = tpu.memref_slice %arg4[%7, %c6_i32_32, %c0_i32_33] : memref<2x8x128xf32, #tpu.memory_space<vmem>> -> memref<1x1x128xf32, #tpu.memory_space<vmem>>
    %40 = tpu.memref_squeeze %39 : memref<1x1x128xf32, #tpu.memory_space<vmem>> -> memref<1x128xf32, #tpu.memory_space<vmem>>
    %41 = tpu.memref_slice %arg5[%7, %c6_i32] : memref<2x8x!tpu.dma_semaphore, #tpu.memory_space<semaphore_mem>> -> memref<1x1x!tpu.dma_semaphore, #tpu.memory_space<semaphore_mem>>
    %42 = tpu.memref_squeeze %41 : memref<1x1x!tpu.dma_semaphore, #tpu.memory_space<semaphore_mem>> -> memref<!tpu.dma_semaphore, #tpu.memory_space<semaphore_mem>>
    tpu.wait_dma2 semaphore(%42 : memref<!tpu.dma_semaphore, #tpu.memory_space<semaphore_mem>>) src(%38 : memref<1x128xf32, #tpu.memory_space<any>>) dst(%40 : memref<1x128xf32, #tpu.memory_space<vmem>>)
    %c7_i32 = arith.constant 7 : i32
    %c0_i32_34 = arith.constant 0 : i32
    %c0_i32_35 = arith.constant 0 : i32
    %43 = tpu.memref_slice %arg2[%c0_i32_34, %c0_i32_35] : memref<64x128xf32, #tpu.memory_space<any>> -> memref<1x128xf32, #tpu.memory_space<any>>
    %c7_i32_36 = arith.constant 7 : i32
    %c0_i32_37 = arith.constant 0 : i32
    %44 = tpu.memref_slice %arg4[%7, %c7_i32_36, %c0_i32_37] : memref<2x8x128xf32, #tpu.memory_space<vmem>> -> memref<1x1x128xf32, #tpu.memory_space<vmem>>
    %45 = tpu.memref_squeeze %44 : memref<1x1x128xf32, #tpu.memory_space<vmem>> -> memref<1x128xf32, #tpu.memory_space<vmem>>
    %46 = tpu.memref_slice %arg5[%7, %c7_i32] : memref<2x8x!tpu.dma_semaphore, #tpu.memory_space<semaphore_mem>> -> memref<1x1x!tpu.dma_semaphore, #tpu.memory_space<semaphore_mem>>
    %47 = tpu.memref_squeeze %46 : memref<1x1x!tpu.dma_semaphore, #tpu.memory_space<semaphore_mem>> -> memref<!tpu.dma_semaphore, #tpu.memory_space<semaphore_mem>>
    tpu.wait_dma2 semaphore(%47 : memref<!tpu.dma_semaphore, #tpu.memory_space<semaphore_mem>>) src(%43 : memref<1x128xf32, #tpu.memory_space<any>>) dst(%45 : memref<1x128xf32, #tpu.memory_space<vmem>>)
    %48 = arith.index_cast %7 : i32 to index
    %c0 = arith.constant 0 : index
    %c0_38 = arith.constant 0 : index
    %49 = vector.load %arg4[%48, %c0, %c0_38] : memref<2x8x128xf32, #tpu.memory_space<vmem>>, vector<1x8x128xf32>
    %50 = vector.shape_cast %49 : vector<1x8x128xf32> to vector<8x128xf32>
    %c0_39 = arith.constant 0 : index
    %c0_40 = arith.constant 0 : index
    %51 = vector.load %arg3[%c0_39, %c0_40] : memref<8x128xf32, #tpu.memory_space<vmem>>, vector<8x128xf32>
    tpu.vector_store %arg3[%c0_39, %c0_40], %50 {strides = array<i32>} : memref<8x128xf32, #tpu.memory_space<vmem>>, vector<8x128xf32>,
    return
  }
  func.func @transform_1(%arg0: i32, %arg1: memref<16xi32, #tpu.memory_space<smem>>) -> (i32, i32) {
    %c0_i32 = arith.constant 0 : i32
    %c0_i32_0 = arith.constant 0 : i32
    return %arg0, %c0_i32 : i32, i32
  }
}

</mosaic_0001>

<bundles_post_ra>
// kernel: tpu_custom_call.1
= control target key start
LH: loop header
LB: loop body
LE: loop exit
PB: predicated region body
PF: predicated region fallthrough
CT: control target
= control target key end

     0   :  { %s1287_s9 = smov [#allocation5]   ;;  %s1802_s0 = inlined_call_operand.hbm [shape: s32[16], index: 0, kind: input, shape index: {}]   ;;  %s1803_s1 = inlined_call_operand.hbm [shape: f32[64,128], index: 1, kind: input, shape index: {}]   ;;  %s1804_s2 = inlined_call_operand.hbm [shape: f32[16,128], index: 2, kind: output, shape index: {}]  }
   0x1   :  { %8 = dma.hbm_to_smem %s1802_s0, 16, %s1287_s9, [#allocation4] }
   0x2   :  { %1253 = dma.done.wait [#allocation4], 16 }
   0x3   :  { %1254 = vsyncadd [#allocation4], 4294967280 }
   0x4   :  { %10 = sfence }
   0x5   :  { %11 = vsyncpa [#allocation7], 0 }
   0x6   :  { %13 = vsyncpa [#allocation7 + $0x1], 0  ;;  %s1315_s12 = smov 0   ;;  %s1317_s13 = smov 0  }
   0x7   :  { %s1319_s14 = smov 0  }
   0x8 LB: > { %s640_s0 = sadd.s32 4294967295, %s1285_s14   ;;  %s1332_s15 = sadd.s32 1, %s1285_s14   ;;  %s1285_s14 = sphi %s1319_s14, %s1815_s14   ;;  %s1281_s13 = sphi %s1317_s13, %s1814_s13   ;;  %s1277_s12 = sphi %s1315_s12, %s1813_s12  }
   0x9   : > { %s22_s16 = ssub.s32 %s1285_s14, %s1332_s15  ;;  %s25_s17 = sadd.s32 1, %s1281_s13 }
   0xa   : > { %p23_p0 = scmp.eq.s32.totalorder %s22_s16, 0  ;;  %p641_p1 = scmp.ne.s32.totalorder %s22_s16, 0 }
   0xb   : > { %p29_p2 = scmp.eq.s32.totalorder %s1285_s14, 1  ;;  %p34_p3 = scmp.ne.s32.totalorder %s1281_s13, %s1277_s12 }
   0xc   : > { %s1341_s18 = scalar_select %p23_p0, %s1281_s13, %s25_s17  }
   0xd   : > { %p1343_p4 = por %p641_p1, %p29_p2  ;;  %p35_p5 = scmp.eq.s32.totalorder %s640_s0, 1 }
   0xe   : > { %1806 = sst [smem:[#allocation60_spill]] %s1341_s18  ;;  %p642_p7 = scmp.ge.s32.totalorder %s1285_s14, 2 }
   0xf   : > { %p1347_p6 = por %p35_p5, %p34_p3  ;;  %s1805_s21 = sand.u32 (!%p642_p7), 1, %s1281_s13  }
  0x10   : > { %44 = sbr.rel (%p642_p7) target bundleno = 463 (0x1cf), region = 12  ;;  %s1355_s22 = sshll.u32 (!%p642_p7), %s1805_s21, 3 }
  0x11   : > { %s1808_s20 = scalar_select %p1347_p6, 1, 0 }
  0x12   : > { %p755_p8 = scmp.eq.s32.totalorder (!%p642_p7), %s1285_s14, 0  ;;  %s56_s23 = sld [smem:[#allocation5]] (!%p642_p7) }
  0x13   : > { %s1358_s24 = sld [smem:[#allocation5 + $0x1]] (!%p642_p7)  ;;  %s1288_s25 = smov (!%p642_p7), [#allocation2]  }
  0x14   : > { %s66_s26 = sshll.u32 (!%p642_p7), %s1288_s25, 4  ;;  %s1289_s27 = smov (!%p642_p7), [#allocation2 + $0x1]   ;;  %s1360_s26 = int_to_ptr.vmem [resolvable:$true] %s66_s26 }
  0x15   : > { %s82_s28 = sshll.u32 %s1289_s27, 4  ;;  %s1364_s29 = sld [smem:[#allocation5 + $0x2]]  ;;  %s1362_s28 = int_to_ptr.vmem [resolvable:$true] %s82_s28 }
  0x16   : > { %s1366_s30 = sld [smem:[#allocation5 + $0x3]]  ;;  %s1290_s4 = smov [#allocation2 + $0x2]  }
  0x17   : > { %s98_s5 = sshll.u32 %s1290_s4, 4  ;;  %s1377_s16 = scalar_lea.hbm %s1803_s1, 1024  ;;  %s1399_s5 = int_to_ptr.vmem [resolvable:$true] %s98_s5 }
  0x18   : > { %s645_s3 = sshll.u32 %s56_s23, 4 }
  0x19   : > { %s58_s8 = scalar_lea.hbm %s1803_s1, %s645_s3  ;;  %s647_s9 = sshll.u32 %s1358_s24, 4 }
  0x1a   : > { %s799_s10 = scalar_lea.hbm %s58_s8, 16  ;;  %p804_p12 = scmp.lt.s32.totalorder %s58_s8, %s1803_s1 }
  0x1b   : > { %p800_p9 = scmp.ne.s32.totalorder %s58_s8, %s799_s10  ;;  %p805_p13 = scmp.lt.s32.totalorder %s1377_s16, %s799_s10 }
  0x1d   : > { %p801_p10 = pnand %p800_p9, %p755_p8  ;;  %p806_p0 = por %p805_p13, %p804_p12 }
  0x1f   : > { %p802_p11 = pneg %p801_p10 }
  0x21   : > { %p807_p1 = pnand %p806_p0, %p802_p11 }
  0x23   : > { %810 = shalt.err (!%p807_p1)  }
  0x24   : > { %s811_s23 = scalar_lea.vmem %s1360_s26, 16  ;;  %s1388_s24 = scalar_lea.vmem %s1360_s26, 256 }
  0x25   : > { %p812_p2 = scmp.ne.s32.totalorder %s1360_s26, %s811_s23  ;;  %p818_p7 = scmp.lt.s32.totalorder %s1360_s26, %s1360_s26 }
  0x26   : > { %p819_p9 = scmp.lt.s32.totalorder %s1388_s24, %s811_s23 }
  0x27   : > { %p813_p3 = pnand %p812_p2, %p755_p8 }
  0x28   : > { %p820_p10 = por %p819_p9, %p818_p7 }
  0x29   : > { %p814_p5 = pneg %p813_p3 }
  0x2b   : > { %p821_p12 = pnand %p820_p10, %p814_p5 }
  0x2d   : > { %824 = shalt.err (!%p821_p12)  }
  0x2e   : > { %716 = dma.hbm_to_vmem [thread:$0]  (%p755_p8), %s58_s8, 16, %s1360_s26, [#allocation3] }
  0x2f   : > { %s72_s4 = scalar_lea.hbm %s1803_s1, %s647_s9 }
  0x30   : > { %s825_s6 = scalar_lea.hbm %s72_s4, 16  ;;  %p830_p1 = scmp.lt.s32.totalorder %s72_s4, %s1803_s1 }
  0x31   : > { %p826_p11 = scmp.ne.s32.totalorder %s72_s4, %s825_s6  ;;  %p831_p2 = scmp.lt.s32.totalorder %s1377_s16, %s825_s6 }
  0x33   : > { %p827_p13 = pnand %p826_p11, %p755_p8  ;;  %p832_p3 = por %p831_p2, %p830_p1 }
  0x35   : > { %p828_p0 = pneg %p827_p13 }
  0x37   : > { %p833_p5 = pnand %p832_p3, %p828_p0 }
  0x39   : > { %836 = shalt.err (!%p833_p5)  }
  0x3a   : > { %s837_s8 = scalar_lea.vmem %s1362_s28, 16  ;;  %p844_p12 = scmp.lt.s32.totalorder %s1362_s28, %s1360_s26 }
  0x3b   : > { %p838_p7 = scmp.ne.s32.totalorder %s1362_s28, %s837_s8  ;;  %p845_p11 = scmp.lt.s32.totalorder %s1388_s24, %s837_s8 }
  0x3d   : > { %p839_p9 = pnand %p838_p7, %p755_p8  ;;  %p846_p13 = por %p845_p11, %p844_p12 }
  0x3f   : > { %p840_p10 = pneg %p839_p9 }
  0x41   : > { %p847_p6 = pnand %p846_p13, %p840_p10 }
  0x43   : > { %850 = shalt.err (!%p847_p6)  }
  0x44   : > { %717 = dma.hbm_to_vmem [thread:$0]  (%p755_p8), %s72_s4, 16, %s1362_s28, [#allocation3 + $0x1] }
  0x45   : > { %s649_s9 = sshll.u32 %s1364_s29, 4  ;;  %s651_s11 = sshll.u32 %s1366_s30, 4 }
  0x46   : > { %s88_s25 = scalar_lea.hbm %s1803_s1, %s649_s9  ;;  %s1425_s3 = scalar_lea.hbm %s1803_s1, %s651_s11 }
  0x47   : > { %s851_s6 = scalar_lea.hbm %s88_s25, 16  ;;  %p856_p2 = scmp.lt.s32.totalorder %s88_s25, %s1803_s1 }
  0x48   : > { %p852_p6 = scmp.ne.s32.totalorder %s88_s25, %s851_s6  ;;  %p857_p3 = scmp.lt.s32.totalorder %s1377_s16, %s851_s6 }
  0x4a   : > { %p853_p0 = pnand %p852_p6, %p755_p8  ;;  %p858_p5 = por %p857_p3, %p856_p2 }
  0x4c   : > { %p854_p1 = pneg %p853_p0 }
  0x4e   : > { %p859_p7 = pnand %p858_p5, %p854_p1 }
  0x50   : > { %862 = shalt.err (!%p859_p7)  }
  0x51   : > { %s863_s28 = scalar_lea.vmem %s1399_s5, 16  ;;  %p870_p11 = scmp.lt.s32.totalorder %s1399_s5, %s1360_s26 }
  0x52   : > { %p864_p9 = scmp.ne.s32.totalorder %s1399_s5, %s863_s28  ;;  %p871_p13 = scmp.lt.s32.totalorder %s1388_s24, %s863_s28 }
  0x54   : > { %p865_p10 = pnand %p864_p9, %p755_p8  ;;  %p872_p6 = por %p871_p13, %p870_p11 }
  0x56   : > { %p866_p12 = pneg %p865_p10 }
  0x58   : > { %p873_p0 = pnand %p872_p6, %p866_p12 }
  0x5a   : > { %876 = shalt.err (!%p873_p0)  }
  0x5b   : > { %718 = dma.hbm_to_vmem [thread:$0]  (%p755_p8), %s88_s25, 16, %s1399_s5, [#allocation3 + $0x2] }
  0x5c   : > { %s1443_s29 = sld [smem:[#allocation5 + $0x4]]  ;;  %s1291_s30 = smov [#allocation2 + $0x3]  }
  0x5d   : > { %s114_s4 = sshll.u32 %s1291_s30, 4  ;;  %s1292_s8 = smov [#allocation2 + $0x4]   ;;  %s115_s4 = int_to_ptr.vmem [resolvable:$true] %s114_s4 }
  0x5e   : > { %s130_s9 = sshll.u32 %s1292_s8, 4  ;;  %s877_s11 = scalar_lea.hbm %s1425_s3, 16  ;;  %s131_s9 = int_to_ptr.vmem [resolvable:$true] %s130_s9 }
  0x5f   : > { %p878_p1 = scmp.ne.s32.totalorder %s1425_s3, %s877_s11  ;;  %p882_p5 = scmp.lt.s32.totalorder %s1425_s3, %s1803_s1 }
  0x60   : > { %p883_p7 = scmp.lt.s32.totalorder %s1377_s16, %s877_s11 }
  0x61   : > { %p879_p2 = pnand %p878_p1, %p755_p8 }
  0x62   : > { %p884_p9 = por %p883_p7, %p882_p5 }
  0x63   : > { %p880_p3 = pneg %p879_p2 }
  0x65   : > { %p885_p10 = pnand %p884_p9, %p880_p3 }
  0x67   : > { %888 = shalt.err (!%p885_p10)  }
  0x68   : > { %s889_s5 = scalar_lea.vmem %s115_s4, 16  ;;  %p896_p6 = scmp.lt.s32.totalorder %s115_s4, %s1360_s26 }
  0x69   : > { %p890_p12 = scmp.ne.s32.totalorder %s115_s4, %s889_s5  ;;  %p897_p0 = scmp.lt.s32.totalorder %s1388_s24, %s889_s5 }
  0x6b   : > { %p891_p11 = pnand %p890_p12, %p755_p8  ;;  %p898_p1 = por %p897_p0, %p896_p6 }
  0x6d   : > { %p892_p13 = pneg %p891_p11 }
  0x6f   : > { %p899_p2 = pnand %p898_p1, %p892_p13 }
  0x71   : > { %902 = shalt.err (!%p899_p2)  }
  0x72   : > { %719 = dma.hbm_to_vmem [thread:$0]  (%p755_p8), %s1425_s3, 16, %s115_s4, [#allocation3 + $0x3] }
  0x73   : > { %s1461_s25 = sld [smem:[#allocation5 + $0x5]]  ;;  %s653_s27 = sshll.u32 %s1443_s29, 4 }
  0x74   : > { %s1463_s23 = sld [smem:[#allocation5 + $0x6]]  ;;  %s1293_s6 = smov [#allocation2 + $0x5]  }
  0x75   : > { %s146_s7 = sshll.u32 %s1293_s6, 4  ;;  %s120_s30 = scalar_lea.hbm %s1803_s1, %s653_s27  ;;  %s1469_s7 = int_to_ptr.vmem [resolvable:$true] %s146_s7 }
  0x76   : > { %s903_s8 = scalar_lea.hbm %s120_s30, 16  ;;  %p908_p9 = scmp.lt.s32.totalorder %s120_s30, %s1803_s1 }
  0x77   : > { %p904_p3 = scmp.ne.s32.totalorder %s120_s30, %s903_s8  ;;  %p909_p10 = scmp.lt.s32.totalorder %s1377_s16, %s903_s8 }
  0x79   : > { %p905_p5 = pnand %p904_p3, %p755_p8  ;;  %p910_p12 = por %p909_p10, %p908_p9 }
  0x7b   : > { %p906_p7 = pneg %p905_p5 }
  0x7d   : > { %p911_p11 = pnand %p910_p12, %p906_p7 }
  0x7f   : > { %914 = shalt.err (!%p911_p11)  }
  0x80   : > { %s915_s29 = scalar_lea.vmem %s131_s9, 16  ;;  %p922_p1 = scmp.lt.s32.totalorder %s131_s9, %s1360_s26 }
  0x81   : > { %p916_p13 = scmp.ne.s32.totalorder %s131_s9, %s915_s29  ;;  %p923_p2 = scmp.lt.s32.totalorder %s1388_s24, %s915_s29 }
  0x83   : > { %p917_p6 = pnand %p916_p13, %p755_p8  ;;  %p924_p3 = por %p923_p2, %p922_p1 }
  0x85   : > { %p918_p0 = pneg %p917_p6 }
  0x87   : > { %p925_p5 = pnand %p924_p3, %p918_p0 }
  0x89   : > { %928 = shalt.err (!%p925_p5)  }
  0x8a   : > { %720 = dma.hbm_to_vmem [thread:$0]  (%p755_p8), %s120_s30, 16, %s131_s9, [#allocation3 + $0x4] }
  0x8b   : > { %s1483_s11 = sld [smem:[#allocation5 + $0x7]]  ;;  %s655_s0 = sshll.u32 %s1461_s25, 4 }
  0x8c   : > { %s1294_s17 = smov [#allocation2 + $0x6]   ;;  %s136_s10 = scalar_lea.hbm %s1803_s1, %s655_s0 }
  0x8d   : > { %s162_s5 = sshll.u32 %s1294_s17, 4  ;;  %s657_s28 = sshll.u32 %s1463_s23, 4  ;;  %s163_s5 = int_to_ptr.vmem [resolvable:$true] %s162_s5 }
  0x8e   : > { %s929_s8 = scalar_lea.hbm %s136_s10, 16  ;;  %p934_p12 = scmp.lt.s32.totalorder %s136_s10, %s1803_s1 }
  0x8f   : > { %p930_p7 = scmp.ne.s32.totalorder %s136_s10, %s929_s8  ;;  %p935_p11 = scmp.lt.s32.totalorder %s1377_s16, %s929_s8 }
  0x91   : > { %p931_p9 = pnand %p930_p7, %p755_p8  ;;  %p936_p13 = por %p935_p11, %p934_p12 }
  0x93   : > { %p932_p10 = pneg %p931_p9 }
  0x95   : > { %p937_p6 = pnand %p936_p13, %p932_p10 }
  0x97   : > { %940 = shalt.err (!%p937_p6)  }
  0x98   : > { %s941_s9 = scalar_lea.vmem %s1469_s7, 16  ;;  %p948_p3 = scmp.lt.s32.totalorder %s1469_s7, %s1360_s26 }
  0x99   : > { %p942_p0 = scmp.ne.s32.totalorder %s1469_s7, %s941_s9  ;;  %p949_p5 = scmp.lt.s32.totalorder %s1388_s24, %s941_s9 }
  0x9b   : > { %p943_p1 = pnand %p942_p0, %p755_p8  ;;  %p950_p7 = por %p949_p5, %p948_p3 }
  0x9d   : > { %p944_p2 = pneg %p943_p1 }
  0x9f   : > { %p951_p9 = pnand %p950_p7, %p944_p2 }
  0xa1   : > { %954 = shalt.err (!%p951_p9)  }
  0xa2   : > { %721 = dma.hbm_to_vmem [thread:$0]  (%p755_p8), %s136_s10, 16, %s1469_s7, [#allocation3 + $0x5] }
  0xa3   : > { %s152_s30 = scalar_lea.hbm %s1803_s1, %s657_s28 }
  0xa4   : > { %s955_s29 = scalar_lea.hbm %s152_s30, 16  ;;  %p960_p13 = scmp.lt.s32.totalorder %s152_s30, %s1803_s1 }
  0xa5   : > { %p956_p10 = scmp.ne.s32.totalorder %s152_s30, %s955_s29  ;;  %p961_p6 = scmp.lt.s32.totalorder %s1377_s16, %s955_s29 }
  0xa7   : > { %p957_p12 = pnand %p956_p10, %p755_p8  ;;  %p962_p0 = por %p961_p6, %p960_p13 }
  0xa9   : > { %p958_p11 = pneg %p957_p12 }
  0xab   : > { %p963_p1 = pnand %p962_p0, %p958_p11 }
  0xad   : > { %966 = shalt.err (!%p963_p1)  }
  0xae   : > { %s967_s27 = scalar_lea.vmem %s163_s5, 16  ;;  %p974_p7 = scmp.lt.s32.totalorder %s163_s5, %s1360_s26 }
  0xaf   : > { %p968_p2 = scmp.ne.s32.totalorder %s163_s5, %s967_s27  ;;  %p975_p9 = scmp.lt.s32.totalorder %s1388_s24, %s967_s27 }
  0xb1   : > { %p969_p3 = pnand %p968_p2, %p755_p8  ;;  %p976_p10 = por %p975_p9, %p974_p7 }
  0xb3   : > { %p970_p5 = pneg %p969_p3 }
  0xb5   : > { %p977_p12 = pnand %p976_p10, %p970_p5 }
  0xb7   : > { %980 = shalt.err (!%p977_p12)  }
  0xb8   : > { %722 = dma.hbm_to_vmem [thread:$0]  (%p755_p8), %s152_s30, 16, %s163_s5, [#allocation3 + $0x6] }
  0xb9   : > { %s659_s7 = sshll.u32 %s1483_s11, 4  ;;  %s1295_s8 = smov [#allocation2 + $0x7]  }
  0xba   : > { %s168_s28 = scalar_lea.hbm %s1803_s1, %s659_s7  ;;  %s178_s3 = sshll.u32 %s1295_s8, 4  ;;  %s179_s3 = int_to_ptr.vmem [resolvable:$true] %s178_s3 }
  0xbb   : > { %s981_s4 = scalar_lea.hbm %s168_s28, 16  ;;  %p986_p0 = scmp.lt.s32.totalorder %s168_s28, %s1803_s1 }
  0xbc   : > { %p982_p11 = scmp.ne.s32.totalorder %s168_s28, %s981_s4  ;;  %p987_p1 = scmp.lt.s32.totalorder %s1377_s16, %s981_s4 }
  0xbe   : > { %p983_p13 = pnand %p982_p11, %p755_p8  ;;  %p988_p2 = por %p987_p1, %p986_p0 }
  0xc0   : > { %p984_p6 = pneg %p983_p13 }
  0xc2   : > { %p989_p3 = pnand %p988_p2, %p984_p6 }
  0xc4   : > { %992 = shalt.err (!%p989_p3)  }
  0xc5   : > { %s993_s11 = scalar_lea.vmem %s179_s3, 16  ;;  %p1000_p10 = scmp.lt.s32.totalorder %s179_s3, %s1360_s26 }
  0xc6   : > { %p994_p5 = scmp.ne.s32.totalorder %s179_s3, %s993_s11  ;;  %p1001_p12 = scmp.lt.s32.totalorder %s1388_s24, %s993_s11 }
  0xc8   : > { %p995_p7 = pnand %p994_p5, %p755_p8  ;;  %p1002_p11 = por %p1001_p12, %p1000_p10 }
  0xca   : > { %p996_p9 = pneg %p995_p7 }
  0xcc   : > { %p1003_p13 = pnand %p1002_p11, %p996_p9 }
  0xce   : > { %1006 = shalt.err (!%p1003_p13)  }
  0xcf   : > { %723 = dma.hbm_to_vmem [thread:$0]  (%p755_p8), %s168_s28, 16, %s179_s3, [#allocation3 + $0x7] }
  0xd0   : > { %p756_p6 = scmp.lt.s32.totalorder %s1332_s15, 2  ;;  %s187_s5 = sand.u32 1, %s1332_s15 }
  0xd1   : > { %s713_s23 = sshll.u32 %s1285_s14, 3  ;;  %s663_s30 = sshll.u32 %s187_s5, 3 }
  0xd2   : > { %s1540_s29 = sadd.s32 8, %s713_s23  ;;  %s1547_s7 = scalar_lea.vmem [#allocation2], %s663_s30 }
  0xd3   : > { %s725_s0 = scalar_select %p756_p6, [#allocation5], [#allocation42] }
  0xd4   : > { %s726_s17 = scalar_select %p756_p6, %s1540_s29, 0 }
  0xd5   : > { %s202_s6 = sshll.u32 %s1547_s7, 4  ;;  %s206_s10 = sadd.s32 1, %s1540_s29  ;;  %s203_s6 = int_to_ptr.vmem [resolvable:$true] %s202_s6 }
  0xd6   : > { %s189_s27 = sld [smem:[%s725_s0 + %s726_s17]]  ;;  %s544_s28 = scalar_lea.vmem %s1547_s7, 1 [#allocation2] }
  0xd7   : > { %s728_s8 = scalar_select %p756_p6, [#allocation5], [#allocation43] }
  0xd8   : > { %s1817_s10 = smov (!%p756_p6, %s206_s10), 0  ;;  %s220_s3 = sshll.u32 %s544_s28, 4  ;;  %s1561_s3 = int_to_ptr.vmem [resolvable:$true] %s220_s3 }
  0xd9   : > { %s1556_s4 = sld [smem:[%s728_s8 + %s1817_s10]]  ;;  %s1558_s9 = scalar_lea.sflag [#allocation3], %s663_s30 }
  0xda   : > { %s224_s17 = sadd.s32 2, %s1540_s29 }
  0xdc   : > { %s662_s11 = sshll.u32 %s189_s27, 4 }
  0xdd   : > { %s191_s0 = scalar_lea.hbm %s1803_s1, %s662_s11 }
  0xde   : > { %s1007_s21 = scalar_lea.hbm %s191_s0, 16  ;;  %p1012_p2 = scmp.lt.s32.totalorder %s191_s0, %s1803_s1 }
  0xdf   : > { %p1008_p8 = scmp.ne.s32.totalorder %s191_s0, %s1007_s21  ;;  %p1013_p3 = scmp.lt.s32.totalorder %s1377_s16, %s1007_s21 }
  0xe1   : > { %p1009_p0 = pnand %p1008_p8, %p756_p6  ;;  %p1014_p5 = por %p1013_p3, %p1012_p2 }
  0xe3   : > { %p1010_p1 = pneg %p1009_p0 }
  0xe5   : > { %p1015_p7 = pnand %p1014_p5, %p1010_p1 }
  0xe7   : > { %1018 = shalt.err (!%p1015_p7)  }
  0xe8   : > { %s1019_s30 = scalar_lea.vmem %s203_s6, 16  ;;  %p1026_p11 = scmp.lt.s32.totalorder %s203_s6, %s1360_s26 }
  0xe9   : > { %p1020_p9 = scmp.ne.s32.totalorder %s203_s6, %s1019_s30  ;;  %p1027_p13 = scmp.lt.s32.totalorder %s1388_s24, %s1019_s30 }
  0xeb   : > { %p1021_p10 = pnand %p1020_p9, %p756_p6  ;;  %p1028_p8 = por %p1027_p13, %p1026_p11 }
  0xed   : > { %p1022_p12 = pneg %p1021_p10 }
  0xef   : > { %p1029_p0 = pnand %p1028_p8, %p1022_p12 }
  0xf1   : > { %1032 = shalt.err (!%p1029_p0)  }
  0xf2   : > { %727 = dma.hbm_to_vmem [thread:$0]  (%p756_p6), %s191_s0, 16, %s203_s6, %s1558_s9 }
  0xf3   : > { %s731_s21 = scalar_select %p756_p6, [#allocation5], [#allocation44] }
  0xf4   : > { %s1819_s17 = smov (!%p756_p6, %s224_s17), 0  ;;  %s664_s27 = sshll.u32 %s1556_s4, 4 }
  0xf5   : > { %s552_s8 = scalar_lea.vmem %s1547_s7, 2 [#allocation2]  ;;  %s209_s23 = scalar_lea.hbm %s1803_s1, %s664_s27 }
  0xf6   : > { %s1589_s28 = sld [smem:[%s731_s21 + %s1819_s17]]  ;;  %s1033_s10 = scalar_lea.hbm %s209_s23, 16 }
  0xf7   : > { %p1034_p1 = scmp.ne.s32.totalorder %s209_s23, %s1033_s10  ;;  %p1038_p5 = scmp.lt.s32.totalorder %s209_s23, %s1803_s1 }
  0xf8   : > { %p1039_p7 = scmp.lt.s32.totalorder %s1377_s16, %s1033_s10 }
  0xf9   : > { %p1035_p2 = pnand %p1034_p1, %p756_p6 }
  0xfa   : > { %p1040_p9 = por %p1039_p7, %p1038_p5 }
  0xfb   : > { %p1036_p3 = pneg %p1035_p2 }
  0xfd   : > { %p1041_p10 = pnand %p1040_p9, %p1036_p3 }
  0xff   : > { %1044 = shalt.err (!%p1041_p10)  }
 0x100   : > { %s1045_s6 = scalar_lea.vmem %s1561_s3, 16  ;;  %p1052_p8 = scmp.lt.s32.totalorder %s1561_s3, %s1360_s26 }
 0x101   : > { %p1046_p12 = scmp.ne.s32.totalorder %s1561_s3, %s1045_s6  ;;  %p1053_p0 = scmp.lt.s32.totalorder %s1388_s24, %s1045_s6 }
 0x103   : > { %p1047_p11 = pnand %p1046_p12, %p756_p6  ;;  %p1054_p1 = por %p1053_p0, %p1052_p8 }
 0x105   : > { %p1048_p13 = pneg %p1047_p11 }
 0x107   : > { %p1055_p2 = pnand %p1054_p1, %p1048_p13 }
 0x109   : > { %1058 = shalt.err (!%p1055_p2)  }
 0x10a   : > { %s1809_s4 = scalar_lea.sflag %s1558_s9, 1 [#allocation3]  ;;  %s238_s25 = sshll.u32 %s552_s8, 4  ;;  %s239_s25 = int_to_ptr.vmem [resolvable:$true] %s238_s25 }
 0x10b   : > { %730 = dma.hbm_to_vmem [thread:$0]  (%p756_p6), %s209_s23, 16, %s1561_s3, %s1809_s4 }
 0x10c   : > { %s242_s0 = sadd.s32 3, %s1540_s29  ;;  %s555_s17 = scalar_lea.sflag %s1558_s9, 2 [#allocation3] }
 0x10d   : > { %s734_s21 = scalar_select %p756_p6, [#allocation5], [#allocation45] }
 0x10e   : > { %s1821_s0 = smov (!%p756_p6, %s242_s0), 0  ;;  %s667_s27 = sshll.u32 %s1589_s28, 4 }
 0x10f   : > { %s560_s11 = scalar_lea.vmem %s1547_s7, 3 [#allocation2]  ;;  %s227_s30 = scalar_lea.hbm %s1803_s1, %s667_s27 }
 0x110   : > { %s1620_s6 = sld [smem:[%s734_s21 + %s1821_s0]]  ;;  %s1059_s18 = scalar_lea.hbm %s227_s30, 16 }
 0x111   : > { %p1060_p3 = scmp.ne.s32.totalorder %s227_s30, %s1059_s18  ;;  %p1064_p9 = scmp.lt.s32.totalorder %s227_s30, %s1803_s1 }
 0x112   : > { %p1065_p10 = scmp.lt.s32.totalorder %s1377_s16, %s1059_s18 }
 0x113   : > { %p1061_p5 = pnand %p1060_p3, %p756_p6 }
 0x114   : > { %p1066_p12 = por %p1065_p10, %p1064_p9 }
 0x115   : > { %p1062_p7 = pneg %p1061_p5 }
 0x117   : > { %p1067_p11 = pnand %p1066_p12, %p1062_p7 }
 0x119   : > { %1070 = shalt.err (!%p1067_p11)  }
 0x11a   : > { %s1071_s23 = scalar_lea.vmem %s239_s25, 16  ;;  %p1078_p1 = scmp.lt.s32.totalorder %s239_s25, %s1360_s26 }
 0x11b   : > { %p1072_p13 = scmp.ne.s32.totalorder %s239_s25, %s1071_s23  ;;  %p1079_p2 = scmp.lt.s32.totalorder %s1388_s24, %s1071_s23 }
 0x11d   : > { %p1073_p8 = pnand %p1072_p13, %p756_p6  ;;  %p1080_p3 = por %p1079_p2, %p1078_p1 }
 0x11f   : > { %p1074_p0 = pneg %p1073_p8 }
 0x121   : > { %p1081_p5 = pnand %p1080_p3, %p1074_p0 }
 0x123   : > { %1084 = shalt.err (!%p1081_p5)  }
 0x124   : > { %733 = dma.hbm_to_vmem [thread:$0]  (%p756_p6), %s227_s30, 16, %s239_s25, %s555_s17 }
 0x125   : > { %s256_s18 = sshll.u32 %s560_s11, 4  ;;  %s260_s28 = sadd.s32 4, %s1540_s29  ;;  %s257_s18 = int_to_ptr.vmem [resolvable:$true] %s256_s18 }
 0x126   : > { %s563_s4 = scalar_lea.sflag %s1558_s9, 3 [#allocation3]  ;;  %s1823_s28 = smov (!%p756_p6, %s260_s28), 0 }
 0x127   : > { %s737_s0 = scalar_select %p756_p6, [#allocation5], [#allocation46] }
 0x128   : > { %s670_s21 = sshll.u32 %s1620_s6, 4  ;;  %s568_s27 = scalar_lea.vmem %s1547_s7, 4 [#allocation2] }
 0x129   : > { %s245_s3 = scalar_lea.hbm %s1803_s1, %s670_s21  ;;  %s1645_s8 = sld [smem:[%s737_s0 + %s1823_s28]] }
 0x12a   : > { %s1085_s23 = scalar_lea.hbm %s245_s3, 16  ;;  %p1090_p12 = scmp.lt.s32.totalorder %s245_s3, %s1803_s1 }
 0x12b   : > { %p1086_p7 = scmp.ne.s32.totalorder %s245_s3, %s1085_s23  ;;  %p1091_p11 = scmp.lt.s32.totalorder %s1377_s16, %s1085_s23 }
 0x12d   : > { %p1087_p9 = pnand %p1086_p7, %p756_p6  ;;  %p1092_p13 = por %p1091_p11, %p1090_p12 }
 0x12f   : > { %p1088_p10 = pneg %p1087_p9 }
 0x131   : > { %p1093_p8 = pnand %p1092_p13, %p1088_p10 }
 0x133   : > { %1096 = shalt.err (!%p1093_p8)  }
 0x134   : > { %s1097_s11 = scalar_lea.vmem %s257_s18, 16  ;;  %p1104_p3 = scmp.lt.s32.totalorder %s257_s18, %s1360_s26 }
 0x135   : > { %p1098_p0 = scmp.ne.s32.totalorder %s257_s18, %s1097_s11  ;;  %p1105_p5 = scmp.lt.s32.totalorder %s1388_s24, %s1097_s11 }
 0x137   : > { %p1099_p1 = pnand %p1098_p0, %p756_p6  ;;  %p1106_p7 = por %p1105_p5, %p1104_p3 }
 0x139   : > { %p1100_p2 = pneg %p1099_p1 }
 0x13b   : > { %p1107_p9 = pnand %p1106_p7, %p1100_p2 }
 0x13d   : > { %1110 = shalt.err (!%p1107_p9)  }
 0x13e   : > { %736 = dma.hbm_to_vmem [thread:$0]  (%p756_p6), %s245_s3, 16, %s257_s18, %s563_s4 }
 0x13f   : > { %s274_s30 = sshll.u32 %s568_s27, 4  ;;  %s278_s6 = sadd.s32 5, %s1540_s29  ;;  %s275_s30 = int_to_ptr.vmem [resolvable:$true] %s274_s30 }
 0x140   : > { %s571_s28 = scalar_lea.sflag %s1558_s9, 4 [#allocation3]  ;;  %s1825_s6 = smov (!%p756_p6, %s278_s6), 0 }
 0x141   : > { %s740_s0 = scalar_select %p756_p6, [#allocation5], [#allocation47] }
 0x142   : > { %s673_s21 = sshll.u32 %s1645_s8, 4  ;;  %s576_s5 = scalar_lea.vmem %s1547_s7, 5 [#allocation2] }
 0x143   : > { %s263_s25 = scalar_lea.hbm %s1803_s1, %s673_s21  ;;  %s1670_s17 = sld [smem:[%s740_s0 + %s1825_s6]] }
 0x144   : > { %s1111_s11 = scalar_lea.hbm %s263_s25, 16  ;;  %p1116_p13 = scmp.lt.s32.totalorder %s263_s25, %s1803_s1 }
 0x145   : > { %p1112_p10 = scmp.ne.s32.totalorder %s263_s25, %s1111_s11  ;;  %p1117_p8 = scmp.lt.s32.totalorder %s1377_s16, %s1111_s11 }
 0x147   : > { %p1113_p12 = pnand %p1112_p10, %p756_p6  ;;  %p1118_p0 = por %p1117_p8, %p1116_p13 }
 0x149   : > { %p1114_p11 = pneg %p1113_p12 }
 0x14b   : > { %p1119_p1 = pnand %p1118_p0, %p1114_p11 }
 0x14d   : > { %1122 = shalt.err (!%p1119_p1)  }
 0x14e   : > { %s1123_s27 = scalar_lea.vmem %s275_s30, 16  ;;  %p1130_p7 = scmp.lt.s32.totalorder %s275_s30, %s1360_s26 }
 0x14f   : > { %p1124_p2 = scmp.ne.s32.totalorder %s275_s30, %s1123_s27  ;;  %p1131_p9 = scmp.lt.s32.totalorder %s1388_s24, %s1123_s27 }
 0x151   : > { %p1125_p3 = pnand %p1124_p2, %p756_p6  ;;  %p1132_p10 = por %p1131_p9, %p1130_p7 }
 0x153   : > { %p1126_p5 = pneg %p1125_p3 }
 0x155   : > { %p1133_p12 = pnand %p1132_p10, %p1126_p5 }
 0x157   : > { %1136 = shalt.err (!%p1133_p12)  }
 0x158   : > { %739 = dma.hbm_to_vmem [thread:$0]  (%p756_p6), %s263_s25, 16, %s275_s30, %s571_s28 }
 0x159   : > { %s292_s3 = sshll.u32 %s576_s5, 4  ;;  %s296_s8 = sadd.s32 6, %s1540_s29  ;;  %s293_s3 = int_to_ptr.vmem [resolvable:$true] %s292_s3 }
 0x15a   : > { %s579_s6 = scalar_lea.sflag %s1558_s9, 5 [#allocation3]  ;;  %s1827_s8 = smov (!%p756_p6, %s296_s8), 0 }
 0x15b   : > { %s743_s0 = scalar_select %p756_p6, [#allocation5], [#allocation48] }
 0x15c   : > { %s676_s21 = sshll.u32 %s1670_s17, 4  ;;  %s584_s10 = scalar_lea.vmem %s1547_s7, 6 [#allocation2] }
 0x15d   : > { %s281_s18 = scalar_lea.hbm %s1803_s1, %s676_s21  ;;  %s1695_s4 = sld [smem:[%s743_s0 + %s1827_s8]] }
 0x15e   : > { %s1137_s27 = scalar_lea.hbm %s281_s18, 16  ;;  %p1142_p0 = scmp.lt.s32.totalorder %s281_s18, %s1803_s1 }
 0x15f   : > { %p1138_p11 = scmp.ne.s32.totalorder %s281_s18, %s1137_s27  ;;  %p1143_p1 = scmp.lt.s32.totalorder %s1377_s16, %s1137_s27 }
 0x161   : > { %p1139_p13 = pnand %p1138_p11, %p756_p6  ;;  %p1144_p2 = por %p1143_p1, %p1142_p0 }
 0x163   : > { %p1140_p8 = pneg %p1139_p13 }
 0x165   : > { %p1145_p3 = pnand %p1144_p2, %p1140_p8 }
 0x167   : > { %1148 = shalt.err (!%p1145_p3)  }
 0x168   : > { %s1149_s5 = scalar_lea.vmem %s293_s3, 16  ;;  %p1156_p10 = scmp.lt.s32.totalorder %s293_s3, %s1360_s26 }
 0x169   : > { %p1150_p5 = scmp.ne.s32.totalorder %s293_s3, %s1149_s5  ;;  %p1157_p12 = scmp.lt.s32.totalorder %s1388_s24, %s1149_s5 }
 0x16b   : > { %p1151_p7 = pnand %p1150_p5, %p756_p6  ;;  %p1158_p11 = por %p1157_p12, %p1156_p10 }
 0x16d   : > { %p1152_p9 = pneg %p1151_p7 }
 0x16f   : > { %p1159_p13 = pnand %p1158_p11, %p1152_p9 }
 0x171   : > { %1162 = shalt.err (!%p1159_p13)  }
 0x172   : > { %742 = dma.hbm_to_vmem [thread:$0]  (%p756_p6), %s281_s18, 16, %s293_s3, %s579_s6 }
 0x173   : > { %s310_s25 = sshll.u32 %s584_s10, 4  ;;  %s314_s17 = sadd.s32 7, %s1540_s29  ;;  %s311_s25 = int_to_ptr.vmem [resolvable:$true] %s310_s25 }
 0x174   : > { %s587_s8 = scalar_lea.sflag %s1558_s9, 6 [#allocation3]  ;;  %s1829_s17 = smov (!%p756_p6, %s314_s17), 0 }
 0x175   : > { %s746_s0 = scalar_select %p756_p6, [#allocation5], [#allocation49] }
 0x176   : > { %s679_s21 = sshll.u32 %s1695_s4, 4  ;;  %s592_s23 = scalar_lea.vmem %s1547_s7, 7 [#allocation2] }
 0x177   : > { %s299_s30 = scalar_lea.hbm %s1803_s1, %s679_s21  ;;  %s315_s28 = sld [smem:[%s746_s0 + %s1829_s17]] }
 0x178   : > { %s1163_s5 = scalar_lea.hbm %s299_s30, 16  ;;  %p1168_p2 = scmp.lt.s32.totalorder %s299_s30, %s1803_s1 }
 0x179   : > { %p1164_p8 = scmp.ne.s32.totalorder %s299_s30, %s1163_s5  ;;  %p1169_p3 = scmp.lt.s32.totalorder %s1377_s16, %s1163_s5 }
 0x17b   : > { %p1165_p0 = pnand %p1164_p8, %p756_p6  ;;  %p1170_p5 = por %p1169_p3, %p1168_p2 }
 0x17d   : > { %p1166_p1 = pneg %p1165_p0 }
 0x17f   : > { %p1171_p7 = pnand %p1170_p5, %p1166_p1 }
 0x181   : > { %1174 = shalt.err (!%p1171_p7)  }
 0x182   : > { %s1175_s6 = scalar_lea.vmem %s311_s25, 16  ;;  %p1182_p11 = scmp.lt.s32.totalorder %s311_s25, %s1360_s26 }
 0x183   : > { %p1176_p9 = scmp.ne.s32.totalorder %s311_s25, %s1175_s6  ;;  %p1183_p13 = scmp.lt.s32.totalorder %s1388_s24, %s1175_s6 }
 0x185   : > { %p1177_p10 = pnand %p1176_p9, %p756_p6  ;;  %p1184_p8 = por %p1183_p13, %p1182_p11 }
 0x187   : > { %p1178_p12 = pneg %p1177_p10 }
 0x189   : > { %p1185_p0 = pnand %p1184_p8, %p1178_p12 }
 0x18b   : > { %1188 = shalt.err (!%p1185_p0)  }
 0x18c   : > { %745 = dma.hbm_to_vmem [thread:$0]  (%p756_p6), %s299_s30, 16, %s311_s25, %s587_s8 }
 0x18d   : > { %s328_s7 = sshll.u32 %s592_s23, 4  ;;  %s332_s10 = sand.u32 1, %s1285_s14  ;;  %s329_s7 = int_to_ptr.vmem [resolvable:$true] %s328_s7 }
 0x18e   : > { %s1733_s18 = sshll.u32 %s332_s10, 3  ;;  %s595_s4 = scalar_lea.sflag %s1558_s9, 7 [#allocation3] }
 0x18f   : > { %s682_s17 = sshll.u32 %s315_s28, 4 }
 0x190   : > { %s317_s11 = scalar_lea.hbm %s1803_s1, %s682_s17 }
 0x191   : > { %s1189_s27 = scalar_lea.hbm %s317_s11, 16  ;;  %p1194_p5 = scmp.lt.s32.totalorder %s317_s11, %s1803_s1 }
 0x192   : > { %p1190_p1 = scmp.ne.s32.totalorder %s317_s11, %s1189_s27  ;;  %p1195_p7 = scmp.lt.s32.totalorder %s1377_s16, %s1189_s27 }
 0x194   : > { %p1191_p2 = pnand %p1190_p1, %p756_p6  ;;  %p1196_p9 = por %p1195_p7, %p1194_p5 }
 0x196   : > { %p1192_p3 = pneg %p1191_p2 }
 0x198   : > { %p1197_p10 = pnand %p1196_p9, %p1192_p3 }
 0x19a   : > { %1200 = shalt.err (!%p1197_p10)  }
 0x19b   : > { %s1201_s9 = scalar_lea.vmem %s329_s7, 16  ;;  %p1208_p8 = scmp.lt.s32.totalorder %s329_s7, %s1360_s26 }
 0x19c   : > { %p1202_p12 = scmp.ne.s32.totalorder %s329_s7, %s1201_s9  ;;  %p1209_p0 = scmp.lt.s32.totalorder %s1388_s24, %s1201_s9 }
 0x19e   : > { %p1203_p11 = pnand %p1202_p12, %p756_p6  ;;  %p1210_p1 = por %p1209_p0, %p1208_p8 }
 0x1a0   : > { %p1204_p13 = pneg %p1203_p11 }
 0x1a2   : > { %p1211_p2 = pnand %p1210_p1, %p1204_p13 }
 0x1a4   : > { %1214 = shalt.err (!%p1211_p2)  }
 0x1a5   : > { %748 = dma.hbm_to_vmem [thread:$0]  (%p756_p6), %s317_s11, 16, %s329_s7, %s595_s4 }
 0x1a6   : > { %s51_s16 = scalar_lea.vmem [#allocation6], %s1355_s22  ;;  %s334_s25 = scalar_lea.sflag [#allocation3], %s1733_s18 }
 0x1a7   : > { %1255 = dma.done.wait %s334_s25, 16 }
 0x1a8   : > { %1256 = vsyncadd %s334_s25, 4294967280  ;;  %s600_s8 = scalar_lea.sflag %s334_s25, 1 [#allocation3] }
 0x1a9   : > { %1257 = dma.done.wait %s600_s8, 16 }
 0x1aa   : > { %1258 = vsyncadd %s600_s8, 4294967280  ;;  %s603_s23 = scalar_lea.sflag %s334_s25, 2 [#allocation3] }
 0x1ab   : > { %1259 = dma.done.wait %s603_s23, 16 }
 0x1ac   : > { %1260 = vsyncadd %s603_s23, 4294967280  ;;  %s606_s26 = scalar_lea.sflag %s334_s25, 3 [#allocation3] }
 0x1ad   : > { %1261 = dma.done.wait %s606_s26, 16 }
 0x1ae   : > { %1262 = vsyncadd %s606_s26, 4294967280  ;;  %s609_s24 = scalar_lea.sflag %s334_s25, 4 [#allocation3] }
 0x1af   : > { %1263 = dma.done.wait %s609_s24, 16 }
 0x1b0   : > { %1264 = vsyncadd %s609_s24, 4294967280  ;;  %s612_s30 = scalar_lea.sflag %s334_s25, 5 [#allocation3] }
 0x1b1   : > { %1265 = dma.done.wait %s612_s30, 16 }
 0x1b2   : > { %1266 = vsyncadd %s612_s30, 4294967280  ;;  %s615_s28 = scalar_lea.sflag %s334_s25, 6 [#allocation3] }
 0x1b3   : > { %1267 = dma.done.wait %s615_s28, 16 }
 0x1b4   : > { %1268 = vsyncadd %s615_s28, 4294967280  ;;  %s618_s29 = scalar_lea.sflag %s334_s25, 7 [#allocation3] }
 0x1b5   : > { %1269 = dma.done.wait %s618_s29, 16 }
 0x1b6   : > { %1270 = vsyncadd %s618_s29, 4294967280  ;;  %s694_s6 = sshll.u32 %s1285_s14, 7  ;;  %s383_s7 = sshll.u32 %s51_s16, 4  ;;  %s1761_s7 = int_to_ptr.vmem [resolvable:$true] %s383_s7 }
 0x1b7   : > { %s1759_s17 = scalar_lea.hbm %s1804_s2, %s694_s6  ;;  %s366_s0 = scalar_lea.vmem [#allocation2], %s1733_s18 }
 0x1b8   : > { %v367_v0 = vld [vmem:[%s366_s0] sm:$0xff]  ;;  %s1810_s21 = sand.u32 1, %s1281_s13   ;;  %s1215_s27 = scalar_lea.vmem %s1761_s7, 128 }
 0x1b9   : > { %368 = vst [vmem:[%s51_s16] sm:$0xff] %v367_v0  ;;  %s370_s11 = scalar_lea.sflag [#allocation7], %s1810_s21  ;;  %p1216_p6 = scmp.ne.s32.totalorder %s1761_s7, %s1215_s27 }
 0x1ba   : > { %s1296_s5 = smov [#allocation6]  }
 0x1bb   : > { %p1217_p3 = pnand %p1216_p6, %p1343_p4  ;;  %s1219_s3 = sshll.u32 %s1296_s5, 4  ;;  %s1220_s3 = int_to_ptr.vmem [resolvable:$false] %s1219_s3 }
 0x1bc   : > { %s1221_s9 = scalar_lea.vmem %s1220_s3, 256  ;;  %p1222_p7 = scmp.lt.s32.totalorder %s1761_s7, %s1220_s3 }
 0x1bd   : > { %p1218_p5 = pneg %p1217_p3  ;;  %p1223_p9 = scmp.lt.s32.totalorder %s1221_s9, %s1215_s27 }
 0x1bf   : > { %p1224_p10 = por %p1223_p9, %p1222_p7 }
 0x1c1   : > { %p1225_p12 = pnand %p1224_p10, %p1218_p5 }
 0x1c3   : > { %1228 = shalt.err (!%p1225_p12)
}
 0x1c4   : > { %s1229_s22 = scalar_lea.hbm %s1759_s17, 128  ;;  %s1233_s25 = scalar_lea.hbm %s1804_s2, 256 }
 0x1c5   : > { %p1230_p11 = scmp.ne.s32.totalorder %s1759_s17, %s1229_s22  ;;  %p1234_p0 = scmp.lt.s32.totalorder %s1759_s17, %s1804_s2 }
 0x1c6   : > { %p1235_p1 = scmp.lt.s32.totalorder %s1233_s25, %s1229_s22 }
 0x1c7   : > { %p1231_p13 = pnand %p1230_p11, %p1343_p4 }
 0x1c8   : > { %p1236_p2 = por %p1235_p1, %p1234_p0 }
 0x1c9   : > { %p1232_p8 = pneg %p1231_p13 }
 0x1cb   : > { %p1237_p6 = pnand %p1236_p2, %p1232_p8 }
 0x1cd   : > { %1240 = shalt.err (!%p1237_p6)
}
 0x1ce   : > { %749 = dma.vmem_to_hbm [thread:$0]  (%p1343_p4), %s1761_s7, 128, %s1759_s17, %s370_s11  }
 0x1cf PF: > { %p757_p3 = scmp.ge.s32.totalorder %s1285_s14, 1  ;;  %s395_s26 = sand.u32 1, %s1277_s12  }
 0x1d0   : > { %p1811_p5 = scmp.ne.s32.totalorder %s1808_s20, 0  ;;  %s396_s24 = scalar_lea.sflag [#allocation7], %s395_s26 }
 0x1d2   : > { %p752_p7 = pnand %p757_p3, %p1811_p5 }
 0x1d4   : > { %p753_p9 = pneg %p752_p7 }
 0x1d6   : > { %1272 = dma.done.wait (%p753_p9), %s396_s24, 128  }
 0x1d7   : > { %1274 = vsyncadd (%p753_p9), %s396_s24, 4294967168  ;;  %s1812_s30 = sld [smem:[#allocation60_spill]]  ;;  %p16_p10 = scmp.ge.s32.totalorder %s1332_s15, 3  }
 0x1d8   : > { %s1813_s12 = smov %s1281_s13  ;;  %s1815_s14 = smov %s1332_s15 }
 0x1d9   :  { %18 = sbr.rel (!%p16_p10) target bundleno = 8 (0x8), region = 186 }
 0x1dd   : > { %s1814_s13 = smov %s1812_s30 }
 0x1de   :  { %401 = vsyncpa [#allocation7], 1 }
 0x1df   :  { %403 = vsyncpa [#allocation7 + $0x1], 1 }
 0x1e0   :  { %404 = vsyncmov [#allocation3] }
 0x1e3   :  { %s405_s14 = vpop.sfrf %404 }
 0x1e4   :  { %p697_p4 = scmp.ne.s32.totalorder %s405_s14, 0 }
 0x1e6   :  { %409 = shalt.err (%p697_p4)  }
 0x1e7   :  { %411 = vsyncmov [#allocation3 + $0x1] }
 0x1ea   :  { %s412_s19 = vpop.sfrf %411 }
 0x1eb   :  { %p698_p12 = scmp.ne.s32.totalorder %s412_s19, 0 }
 0x1ed   :  { %416 = shalt.err (%p698_p12)  }
 0x1ee   :  { %418 = vsyncmov [#allocation3 + $0x2] }
 0x1f1   :  { %s419_s20 = vpop.sfrf %418 }
 0x1f2   :  { %p699_p11 = scmp.ne.s32.totalorder %s419_s20, 0 }
 0x1f4   :  { %423 = shalt.err (%p699_p11)  }
 0x1f5   :  { %425 = vsyncmov [#allocation3 + $0x3] }
 0x1f8   :  { %s426_s28 = vpop.sfrf %425 }
 0x1f9   :  { %p700_p13 = scmp.ne.s32.totalorder %s426_s28, 0 }
 0x1fb   :  { %430 = shalt.err (%p700_p13)  }
 0x1fc   :  { %432 = vsyncmov [#allocation3 + $0x4] }
 0x1ff   :  { %s433_s15 = vpop.sfrf %432 }
 0x200   :  { %p701_p8 = scmp.ne.s32.totalorder %s433_s15, 0 }
 0x202   :  { %437 = shalt.err (%p701_p8)  }
 0x203   :  { %439 = vsyncmov [#allocation3 + $0x5] }
 0x206   :  { %s440_s1 = vpop.sfrf %439 }
 0x207   :  { %p702_p0 = scmp.ne.s32.totalorder %s440_s1, 0 }
 0x209   :  { %444 = shalt.err (%p702_p0)  }
 0x20a   :  { %446 = vsyncmov [#allocation3 + $0x6] }
 0x20d   :  { %s447_s2 = vpop.sfrf %446 }
 0x20e   :  { %p703_p1 = scmp.ne.s32.totalorder %s447_s2, 0 }
 0x210   :  { %451 = shalt.err (%p703_p1)  }
 0x211   :  { %453 = vsyncmov [#allocation3 + $0x7] }
 0x214   :  { %s454_s12 = vpop.sfrf %453 }
 0x215   :  { %p704_p2 = scmp.ne.s32.totalorder %s454_s12, 0 }
 0x217   :  { %458 = shalt.err (%p704_p2)  }
 0x218   :  { %460 = vsyncmov [#allocation3 + $0x8] }
 0x21b   :  { %s461_s13 = vpop.sfrf %460 }
 0x21c   :  { %p705_p6 = scmp.ne.s32.totalorder %s461_s13, 0 }
 0x21e   :  { %465 = shalt.err (%p705_p6)  }
 0x21f   :  { %467 = vsyncmov [#allocation3 + $0x9] }
 0x222   :  { %s468_s29 = vpop.sfrf %467 }
 0x223   :  { %p706_p3 = scmp.ne.s32.totalorder %s468_s29, 0 }
 0x225   :  { %472 = shalt.err (%p706_p3)  }
 0x226   :  { %474 = vsyncmov [#allocation3 + $0xa] }
 0x229   :  { %s475_s6 = vpop.sfrf %474 }
 0x22a   :  { %p707_p5 = scmp.ne.s32.totalorder %s475_s6, 0 }
 0x22c   :  { %479 = shalt.err (%p707_p5)  }
 0x22d   :  { %481 = vsyncmov [#allocation3 + $0xb] }
 0x230   :  { %s482_s7 = vpop.sfrf %481 }
 0x231   :  { %p708_p7 = scmp.ne.s32.totalorder %s482_s7, 0 }
 0x233   :  { %486 = shalt.err (%p708_p7)  }
 0x234   :  { %488 = vsyncmov [#allocation3 + $0xc] }
 0x237   :  { %s489_s10 = vpop.sfrf %488 }
 0x238   :  { %p709_p9 = scmp.ne.s32.totalorder %s489_s10, 0 }
 0x23a   :  { %493 = shalt.err (%p709_p9)  }
 0x23b   :  { %495 = vsyncmov [#allocation3 + $0xd] }
 0x23e   :  { %s496_s4 = vpop.sfrf %495 }
 0x23f   :  { %p710_p10 = scmp.ne.s32.totalorder %s496_s4, 0 }
 0x241   :  { %500 = shalt.err (%p710_p10)  }
 0x242   :  { %502 = vsyncmov [#allocation3 + $0xe] }
 0x245   :  { %s503_s17 = vpop.sfrf %502 }
 0x246   :  { %p711_p4 = scmp.ne.s32.totalorder %s503_s17, 0 }
 0x248   :  { %507 = shalt.err (%p711_p4)  }
 0x249   :  { %509 = vsyncmov [#allocation3 + $0xf] }
 0x24c   :  { %s510_s0 = vpop.sfrf %509 }
 0x24d   :  { %p712_p12 = scmp.ne.s32.totalorder %s510_s0, 0 }
 0x24f   :  { %514 = shalt.err (%p712_p12)  }

</bundles_post_ra>
